<compile_context>
chip_gen: v6e
topology: v6e:2x2x1
jax: 0.10.0
libtpu: 0.0.40
codegen_flags: <defaults>
</compile_context>

<pallas_src>
import math

import jax
import jax.numpy as jnp
from jax.experimental import pallas as pl
from jax.experimental.pallas import tpu as pltpu  # noqa: F401

# ------------------------- scaled-down configuration -------------------------
VOCAB = 100
MAX_POS = 16
HIDDEN = 64          # "768" in the real model
N_HEADS = 2          # "12"
HEAD_DIM = HIDDEN // N_HEADS
FFN = 128            # "3072"
N_LAYERS = 2         # "6"
CLS_HIDDEN = 32      # "256"
N_CLASSES = 2
H_PAD = 128          # lane-padded hidden width (one vreg lane tile)
OUT_PAD = 128        # lane-dense padded classifier output width
LN_EPS = 1e-12
BN_EPS = 1e-5
NEG_BIG = -1e9

B = 2
S = 8

# ---- VEC slab row layout (one (1,128) f32 row per vector) ----
R_EMB_LN_G = 0
R_EMB_LN_B = 1
R_LAYER0 = 2
ROWS_PER_LAYER = 10          # bq, bk, bv, bo, ln1_g, ln1_b, b1, b2, ln2_g, ln2_b
R_HEAD_B1 = R_LAYER0 + N_LAYERS * ROWS_PER_LAYER
R_BN_G = R_HEAD_B1 + 1
R_BN_B = R_HEAD_B1 + 2
R_BN_M = R_HEAD_B1 + 3
R_BN_V = R_HEAD_B1 + 4
R_HB2 = R_HEAD_B1 + 5
VEC_ROWS = 32                # padded to a multiple of 8 sublanes


def _zero_map(ndim):
    return lambda: (0,) * ndim


# ------------------------- fused pallas kernel -------------------------
def fused_forward_kernel(ids_ref, am_ref, w_ref, eh_ref, vec_ref, o_ref):
    """Embedding -> LN -> N_LAYERS transformer blocks -> classifier head, all VMEM-resident."""
    n_rows = ids_ref.shape[0]          # B*S
    bsz = o_ref.shape[0]
    seq = n_rows // bsz

    def vrow(i):                        # one (1, H_PAD) f32 vector from the VEC slab
        return vec_ref[i:i + 1, :]

    lane = jax.lax.broadcasted_iota(jnp.int32, (1, H_PAD), 1)
    feat_mask = (lane < HIDDEN).astype(jnp.float32)          # real-feature mask for LN

    def ln(x, gi, bi):
        # Padding-aware LayerNorm: lanes >= HIDDEN are exactly 0 on input and output.
        mu = jnp.sum(x, axis=-1, keepdims=True) * (1.0 / HIDDEN)
        d = (x - mu) * feat_mask
        var = jnp.sum(d * d, axis=-1, keepdims=True) * (1.0 / HIDDEN)
        return d * jax.lax.rsqrt(var + LN_EPS) * vrow(gi) + vrow(bi)

    # ---------------- embeddings via in-kernel one-hot matmuls ----------------
    ids = ids_ref[...]                                        # (BS, 1) int32
    col = jax.lax.broadcasted_iota(jnp.int32, (n_rows, H_PAD), 1)
    row = jax.lax.broadcasted_iota(jnp.int32, (n_rows, H_PAD), 0)
    tok_oh = (col == ids).astype(jnp.bfloat16)                # (BS, 128) token one-hot
    pos_oh = None                                             # position of row r = r - b*S
    for b in range(bsz):                                      # static unroll (no int div)
        t = (row >= b * seq) & (row < (b + 1) * seq) & (col == row - b * seq)
        pos_oh = t if pos_oh is None else (pos_oh | t)
    pos_oh = pos_oh.astype(jnp.bfloat16)

    emb = (jnp.dot(tok_oh, eh_ref[:, 0:H_PAD], preferred_element_type=jnp.float32)
           + jnp.dot(pos_oh, eh_ref[:, H_PAD:2 * H_PAD], preferred_element_type=jnp.float32))
    x = ln(emb, R_EMB_LN_G, R_EMB_LN_B)                       # embedding dropout = identity

    # ------- additive attention bias: block-diagonal batch + key padding ------
    r_bs = jax.lax.broadcasted_iota(jnp.int32, (n_rows, n_rows), 0)
    c_bs = jax.lax.broadcasted_iota(jnp.int32, (n_rows, n_rows), 1)
    same = None
    for b in range(bsz):                                      # static unroll
        t = ((r_bs >= b * seq) & (r_bs < (b + 1) * seq)
             & (c_bs >= b * seq) & (c_bs < (b + 1) * seq))
        same = t if same is None else (same | t)
    key_ok = am_ref[...] > 0.0                                # (1, BS), broadcasts over rows
    bias = jnp.where(same & key_ok, 0.0, NEG_BIG)             # (BS, BS) f32

    # Per-head 0/1 column masks (built once from iota).
    hmasks = [((lane >= h * HEAD_DIM) & (lane < (h + 1) * HEAD_DIM)).astype(jnp.float32)
              for h in range(N_HEADS)]

    dims = (((1,), (1,)), ((), ()))     # contract last dims: q @ k^T with no materialized k.T

    for l in range(N_LAYERS):                                 # static unroll
        base = R_LAYER0 + l * ROWS_PER_LAYER
        x_bf = x.astype(jnp.bfloat16)

        # Fused QKV projection; each of Q/K/V occupies its own 128-lane tile of the result,
        # so the slices below are lane-tile aligned. 1/sqrt(head_dim) is folded into Wq/bq.
        qkv = jnp.dot(x_bf, w_ref[l, :, 0:3 * H_PAD], preferred_element_type=jnp.float32)
        q = qkv[:, 0:H_PAD] + vrow(base + 0)
        k = (qkv[:, H_PAD:2 * H_PAD] + vrow(base + 1)).astype(jnp.bfloat16)
        v = qkv[:, 2 * H_PAD:3 * H_PAD] + vrow(base + 2)

        ctx = None
        for h in range(N_HEADS):                              # static unroll
            m = hmasks[h]
            s = jax.lax.dot_general((q * m).astype(jnp.bfloat16), k, dims,
                                    preferred_element_type=jnp.float32)      # (BS, BS)
            s = s + bias
            s = s - jnp.max(s, axis=-1, keepdims=True)
            p = jnp.exp(s)
            p = p * pl.reciprocal(jnp.sum(p, axis=-1, keepdims=True), approx=True)
            term = jnp.dot(p.astype(jnp.bfloat16), (v * m).astype(jnp.bfloat16),
                           preferred_element_type=jnp.float32)               # (BS, H_PAD)
            ctx = term if ctx is None else ctx + term

        attn = (jnp.dot(ctx.astype(jnp.bfloat16), w_ref[l, :, 3 * H_PAD:4 * H_PAD],
                        preferred_element_type=jnp.float32) + vrow(base + 3))
        x = ln(attn + x, base + 4, base + 5)                  # sa_layer_norm

        # Feed-forward (exact erf GELU).
        ff = (jnp.dot(x.astype(jnp.bfloat16), w_ref[l, :, 4 * H_PAD:5 * H_PAD],
                      preferred_element_type=jnp.float32) + vrow(base + 6))
        ff = 0.5 * ff * (1.0 + jax.lax.erf(ff * (1.0 / math.sqrt(2.0))))
        ff = (jnp.dot(ff.astype(jnp.bfloat16), w_ref[l, :, 5 * H_PAD:6 * H_PAD],
                      preferred_element_type=jnp.float32) + vrow(base + 7))
        x = ln(ff + x, base + 8, base + 9)                    # output_layer_norm

    # ---- CLS pooling: value slice of rows 0, S, 2S, ... (no matmul, no extra DMA) ----
    pooled = jnp.concatenate([x[b * seq:b * seq + 1, :] for b in range(bsz)], axis=0)  # (B, H_PAD)

    # Regressor head: Dropout(id) -> Linear -> BatchNorm1d(eval) -> ReLU -> Linear -> Softmax.
    h1 = (jnp.dot(pooled.astype(jnp.bfloat16), eh_ref[:, 2 * H_PAD:3 * H_PAD],
                  preferred_element_type=jnp.float32) + vrow(R_HEAD_B1))
    h1 = (h1 - vrow(R_BN_M)) * jax.lax.rsqrt(vrow(R_BN_V) + BN_EPS)
    h1 = h1 * vrow(R_BN_G) + vrow(R_BN_B)
    h1 = jnp.maximum(h1, 0.0)
    logits = (jnp.dot(h1.astype(jnp.bfloat16), eh_ref[:, 3 * H_PAD:4 * H_PAD],
                      preferred_element_type=jnp.float32) + vrow(R_HB2))
    logits = logits - jnp.max(logits, axis=-1, keepdims=True)
    e = jnp.exp(logits)                              # padded classes (-1e9 bias) underflow to 0
    probs = e / jnp.sum(e, axis=-1, keepdims=True)   # exact division: real classes sum to 1
    o_ref[...] = probs.astype(o_ref.dtype)


# ------------------------- parameter init (logical params) -------------------------
def init_params(key):
    keys = iter(jax.random.split(key, 64))

    def nrm(shape, scale=0.02):
        return jax.random.normal(next(keys), shape, jnp.float32) * scale

    p = {
        "word_emb": nrm((VOCAB, HIDDEN)),
        "pos_emb": nrm((MAX_POS, HIDDEN)),
        "emb_ln_g": jnp.ones((HIDDEN,), jnp.float32),
        "emb_ln_b": jnp.zeros((HIDDEN,), jnp.float32),
        # nn.Linear weights stored pre-transposed as (in, out).
        "wq": jnp.stack([nrm((HIDDEN, HIDDEN)) for _ in range(N_LAYERS)]),
        "wk": jnp.stack([nrm((HIDDEN, HIDDEN)) for _ in range(N_LAYERS)]),
        "wv": jnp.stack([nrm((HIDDEN, HIDDEN)) for _ in range(N_LAYERS)]),
        "wo": jnp.stack([nrm((HIDDEN, HIDDEN)) for _ in range(N_LAYERS)]),
        "w1": jnp.stack([nrm((HIDDEN, FFN)) for _ in range(N_LAYERS)]),
        "w2": jnp.stack([nrm((FFN, HIDDEN)) for _ in range(N_LAYERS)]),
        "bq": jnp.zeros((N_LAYERS, HIDDEN), jnp.float32),
        "bk": jnp.zeros((N_LAYERS, HIDDEN), jnp.float32),
        "bv": jnp.zeros((N_LAYERS, HIDDEN), jnp.float32),
        "bo": jnp.zeros((N_LAYERS, HIDDEN), jnp.float32),
        "b1": jnp.zeros((N_LAYERS, FFN), jnp.float32),
        "b2": jnp.zeros((N_LAYERS, HIDDEN), jnp.float32),
        "ln1_g": jnp.ones((N_LAYERS, HIDDEN), jnp.float32),
        "ln1_b": jnp.zeros((N_LAYERS, HIDDEN), jnp.float32),
        "ln2_g": jnp.ones((N_LAYERS, HIDDEN), jnp.float32),
        "ln2_b": jnp.zeros((N_LAYERS, HIDDEN), jnp.float32),
        "head_w1": nrm((HIDDEN, CLS_HIDDEN)),
        "head_b1": jnp.zeros((CLS_HIDDEN,), jnp.float32),
        "bn_g": jnp.ones((CLS_HIDDEN,), jnp.float32),
        "bn_b": jnp.zeros((CLS_HIDDEN,), jnp.float32),
        "bn_m": jnp.zeros((CLS_HIDDEN,), jnp.float32),   # BN running mean (eval mode)
        "bn_v": jnp.ones((CLS_HIDDEN,), jnp.float32),    # BN running var  (eval mode)
        "head_w2": nrm((CLS_HIDDEN, N_CLASSES)),
        "head_b2": jnp.zeros((N_CLASSES,), jnp.float32),
    }
    return p


# ------------------------- pack logical params into kernel slabs -------------------------
def pack_params(p):
    """Done once, offline: 3 packed slabs replace 24 separate weight inputs."""
    inv = 1.0 / math.sqrt(HEAD_DIM)

    # Per-layer matmul-weight slab (L, 128, 6*128): Wq | Wk | Wv | Wo | W1 | W2,
    # one 128-lane tile per matrix, zero padded. 1/sqrt(head_dim) folded into Wq.
    W = jnp.zeros((N_LAYERS, H_PAD, 6 * H_PAD), jnp.float32)
    for l in range(N_LAYERS):
        W = W.at[l, :HIDDEN, 0 * H_PAD:0 * H_PAD + HIDDEN].set(p["wq"][l] * inv)
        W = W.at[l, :HIDDEN, 1 * H_PAD:1 * H_PAD + HIDDEN].set(p["wk"][l])
        W = W.at[l, :HIDDEN, 2 * H_PAD:2 * H_PAD + HIDDEN].set(p["wv"][l])
        W = W.at[l, :HIDDEN, 3 * H_PAD:3 * H_PAD + HIDDEN].set(p["wo"][l])
        W = W.at[l, :HIDDEN, 4 * H_PAD:4 * H_PAD + FFN].set(p["w1"][l])
        W = W.at[l, :FFN, 5 * H_PAD:5 * H_PAD + HIDDEN].set(p["w2"][l])

    # Embedding + head weight slab (128, 4*128): word_emb | pos_emb | head_W1 | head_W2.
    EH = jnp.zeros((H_PAD, 4 * H_PAD), jnp.float32)
    EH = EH.at[:VOCAB, 0:HIDDEN].set(p["word_emb"])
    EH = EH.at[:MAX_POS, 1 * H_PAD:1 * H_PAD + HIDDEN].set(p["pos_emb"])
    EH = EH.at[:HIDDEN, 2 * H_PAD:2 * H_PAD + CLS_HIDDEN].set(p["head_w1"])
    EH = EH.at[:CLS_HIDDEN, 3 * H_PAD:3 * H_PAD + N_CLASSES].set(p["head_w2"])

    # Vector slab (32, 128) f32: every LN / bias / BN vector, one row each.
    V = jnp.zeros((VEC_ROWS, H_PAD), jnp.float32)
    V = V.at[R_EMB_LN_G, :HIDDEN].set(p["emb_ln_g"])
    V = V.at[R_EMB_LN_B, :HIDDEN].set(p["emb_ln_b"])
    for l in range(N_LAYERS):
        base = R_LAYER0 + l * ROWS_PER_LAYER
        V = V.at[base + 0, :HIDDEN].set(p["bq"][l] * inv)   # fold 1/sqrt(head_dim)
        V = V.at[base + 1, :HIDDEN].set(p["bk"][l])
        V = V.at[base + 2, :HIDDEN].set(p["bv"][l])
        V = V.at[base + 3, :HIDDEN].set(p["bo"][l])
        V = V.at[base + 4, :HIDDEN].set(p["ln1_g"][l])
        V = V.at[base + 5, :HIDDEN].set(p["ln1_b"][l])
        V = V.at[base + 6, :FFN].set(p["b1"][l])
        V = V.at[base + 7, :HIDDEN].set(p["b2"][l])
        V = V.at[base + 8, :HIDDEN].set(p["ln2_g"][l])
        V = V.at[base + 9, :HIDDEN].set(p["ln2_b"][l])
    V = V.at[R_HEAD_B1, :CLS_HIDDEN].set(p["head_b1"])
    V = V.at[R_BN_G, :CLS_HIDDEN].set(p["bn_g"])
    V = V.at[R_BN_B, :CLS_HIDDEN].set(p["bn_b"])
    V = V.at[R_BN_M, :CLS_HIDDEN].set(p["bn_m"])
    V = V.at[R_BN_V, :].set(1.0)
    V = V.at[R_BN_V, :CLS_HIDDEN].set(p["bn_v"])
    # Padded classifier classes get a -1e9 bias -> softmax probability exactly 0.
    V = V.at[R_HB2, :].set(NEG_BIG)
    V = V.at[R_HB2, :N_CLASSES].set(p["head_b2"])

    return {"W": W.astype(jnp.bfloat16),        # bf16 matmul operands (f32 accumulation)
            "EH": EH.astype(jnp.bfloat16),
            "VEC": V}                           # f32 (VPU / LN / BN math stays f32)


# ------------------------- forward pass -------------------------
def distilbert_classifier_gender(packed, input_ids, attention_masks):
    bsz, seq = input_ids.shape
    ids_col = input_ids.reshape(bsz * seq, 1).astype(jnp.int32)          # (BS, 1)
    am_row = attention_masks.reshape(1, bsz * seq).astype(jnp.float32)   # (1, BS)

    inputs = [ids_col, am_row, packed["W"], packed["EH"], packed["VEC"]]
    in_specs = [pl.BlockSpec(a.shape, _zero_map(a.ndim)) for a in inputs]

    out = pl.pallas_call(
        fused_forward_kernel,
        out_shape=jax.ShapeDtypeStruct((bsz, OUT_PAD), jnp.float32),
        in_specs=in_specs,
        out_specs=pl.BlockSpec((bsz, OUT_PAD), _zero_map(2)),
    )(*inputs)
    return out[:, :N_CLASSES]                                             # (B, 2) softmax probs


# ------------------------- main -------------------------
if __name__ == "__main__":
    root = jax.random.PRNGKey(0)
    k_param, k_ids = jax.random.split(root)

    params = init_params(k_param)
    packed = pack_params(params)        # one-time offline packing of all weights

    input_ids = jax.random.randint(k_ids, (B, S), 0, VOCAB, dtype=jnp.int32)
    attention_masks = jnp.array([[1, 1, 1, 1, 1, 1, 1, 1],
                                 [1, 1, 1, 1, 1, 1, 0, 0]], dtype=jnp.int32)

    fwd = jax.jit(distilbert_classifier_gender)
    probs = jax.block_until_ready(fwd(packed, input_ids, attention_masks))

    assert probs.shape == (B, N_CLASSES)
    assert bool(jnp.all(jnp.isfinite(probs)))
    # Classifier softmax rows must sum to 1 (exact division used in the head softmax).
    assert bool(jnp.allclose(jnp.sum(probs, axis=1), 1.0, atol=1e-5))
    print("KERNEL_OK")
</pallas_src>

<mosaic_0001>
module attributes {stable_mosaic.version = 11 : i64} {
  func.func @fused_forward_kernel(%arg0: memref<16x1xi32, #tpu.memory_space<vmem>>, %arg1: memref<1x16xf32, #tpu.memory_space<vmem>>, %arg2: memref<2x128x768xbf16, #tpu.memory_space<vmem>>, %arg3: memref<128x512xbf16, #tpu.memory_space<vmem>>, %arg4: memref<32x128xf32, #tpu.memory_space<vmem>>, %arg5: memref<2x128xf32, #tpu.memory_space<vmem>>) attributes {dimension_semantics = [], scalar_prefetch = 0 : i64, scratch_operands = 0 : i64, tpu.core_type = #tpu.core_type<tc>} {
    %0 = tpu.iota {dimensions = array<i32: 1>} : vector<1x128xi32>
    %c64_i32 = arith.constant 64 : i32
    %1 = vector.broadcast %c64_i32 : i32 to vector<1x128xi32>
    %2 = arith.cmpi slt, %0, %1 : vector<1x128xi32>
    %3 = arith.extui %2 : vector<1x128xi1> to vector<1x128xi32>
    %4 = arith.sitofp %3 : vector<1x128xi32> to vector<1x128xf32>
    %c0 = arith.constant 0 : index
    %c0_0 = arith.constant 0 : index
    %5 = vector.load %arg0[%c0, %c0_0] : memref<16x1xi32, #tpu.memory_space<vmem>>, vector<16x1xi32>
    %6 = tpu.iota {dimensions = array<i32: 1>} : vector<16x128xi32>
    %7 = tpu.iota {dimensions = array<i32: 0>} : vector<16x128xi32>
    %8 = vector.broadcast %5 : vector<16x1xi32> to vector<16x128xi32>
    %9 = arith.cmpi eq, %6, %8 : vector<16x128xi32>
    %10 = arith.extui %9 : vector<16x128xi1> to vector<16x128xi32>
    %11 = arith.sitofp %10 : vector<16x128xi32> to vector<16x128xf32>
    %12 = arith.truncf %11 : vector<16x128xf32> to vector<16x128xbf16>
    %c0_i32 = arith.constant 0 : i32
    %13 = vector.broadcast %c0_i32 : i32 to vector<16x128xi32>
    %14 = arith.cmpi sge, %7, %13 : vector<16x128xi32>
    %c8_i32 = arith.constant 8 : i32
    %15 = vector.broadcast %c8_i32 : i32 to vector<16x128xi32>
    %16 = arith.cmpi slt, %7, %15 : vector<16x128xi32>
    %17 = arith.andi %14, %16 : vector<16x128xi1>
    %c0_i32_1 = arith.constant 0 : i32
    %18 = vector.broadcast %c0_i32_1 : i32 to vector<16x128xi32>
    %19 = arith.subi %7, %18 : vector<16x128xi32>
    %20 = arith.cmpi eq, %6, %19 : vector<16x128xi32>
    %21 = arith.andi %17, %20 : vector<16x128xi1>
    %c8_i32_2 = arith.constant 8 : i32
    %22 = vector.broadcast %c8_i32_2 : i32 to vector<16x128xi32>
    %23 = arith.cmpi sge, %7, %22 : vector<16x128xi32>
    %c16_i32 = arith.constant 16 : i32
    %24 = vector.broadcast %c16_i32 : i32 to vector<16x128xi32>
    %25 = arith.cmpi slt, %7, %24 : vector<16x128xi32>
    %26 = arith.andi %23, %25 : vector<16x128xi1>
    %c8_i32_3 = arith.constant 8 : i32
    %27 = vector.broadcast %c8_i32_3 : i32 to vector<16x128xi32>
    %28 = arith.subi %7, %27 : vector<16x128xi32>
    %29 = arith.cmpi eq, %6, %28 : vector<16x128xi32>
    %30 = arith.andi %26, %29 : vector<16x128xi1>
    %31 = arith.ori %21, %30 : vector<16x128xi1>
    %32 = arith.extui %31 : vector<16x128xi1> to vector<16x128xi32>
    %33 = arith.sitofp %32 : vector<16x128xi32> to vector<16x128xf32>
    %34 = arith.truncf %33 : vector<16x128xf32> to vector<16x128xbf16>
    %c0_4 = arith.constant 0 : index
    %c0_5 = arith.constant 0 : index
    %35 = vector.load %arg3[%c0_4, %c0_5] : memref<128x512xbf16, #tpu.memory_space<vmem>>, vector<128x128xbf16>
    %cst = arith.constant dense<0.000000e+00> : vector<16x128xf32>
    %36 = tpu.matmul %12, %35, %cst {dimension_numbers = #tpu.dot_dimension_numbers<[1], [0], [0], [1], [0, 0, 1, 1], [], []>} : vector<16x128xbf16>, vector<128x128xbf16>, vector<16x128xf32> -> vector<16x128xf32>
    %c0_6 = arith.constant 0 : index
    %c128 = arith.constant 128 : index
    %37 = vector.load %arg3[%c0_6, %c128] : memref<128x512xbf16, #tpu.memory_space<vmem>>, vector<128x128xbf16>
    %cst_7 = arith.constant dense<0.000000e+00> : vector<16x128xf32>
    %38 = tpu.matmul %34, %37, %cst_7 {dimension_numbers = #tpu.dot_dimension_numbers<[1], [0], [0], [1], [0, 0, 1, 1], [], []>} : vector<16x128xbf16>, vector<128x128xbf16>, vector<16x128xf32> -> vector<16x128xf32>
    %39 = arith.addf %36, %38 : vector<16x128xf32>
    %cst_8 = arith.constant dense<0.000000e+00> : vector<16xf32>
    %40 = vector.multi_reduction <add>, %39, %cst_8 [1] : vector<16x128xf32> to vector<16xf32>
    %41 = vector.shape_cast %40 : vector<16xf32> to vector<16x1xf32>
    %cst_9 = arith.constant 1.562500e-02 : f32
    %42 = vector.broadcast %cst_9 : f32 to vector<16x1xf32>
    %43 = arith.mulf %41, %42 : vector<16x1xf32>
    %44 = vector.broadcast %43 : vector<16x1xf32> to vector<16x128xf32>
    %45 = arith.subf %39, %44 : vector<16x128xf32>
    %46 = vector.broadcast %4 : vector<1x128xf32> to vector<16x128xf32>
    %47 = arith.mulf %45, %46 : vector<16x128xf32>
    %48 = arith.mulf %47, %47 : vector<16x128xf32>
    %cst_10 = arith.constant dense<0.000000e+00> : vector<16xf32>
    %49 = vector.multi_reduction <add>, %48, %cst_10 [1] : vector<16x128xf32> to vector<16xf32>
    %50 = vector.shape_cast %49 : vector<16xf32> to vector<16x1xf32>
    %cst_11 = arith.constant 1.562500e-02 : f32
    %51 = vector.broadcast %cst_11 : f32 to vector<16x1xf32>
    %52 = arith.mulf %50, %51 : vector<16x1xf32>
    %cst_12 = arith.constant 9.99999996E-13 : f32
    %53 = vector.broadcast %cst_12 : f32 to vector<16x1xf32>
    %54 = arith.addf %52, %53 : vector<16x1xf32>
    %55 = math.rsqrt %54 : vector<16x1xf32>
    %56 = vector.broadcast %55 : vector<16x1xf32> to vector<16x128xf32>
    %57 = arith.mulf %47, %56 : vector<16x128xf32>
    %c0_13 = arith.constant 0 : index
    %c0_14 = arith.constant 0 : index
    %58 = vector.load %arg4[%c0_13, %c0_14] : memref<32x128xf32, #tpu.memory_space<vmem>>, vector<1x128xf32>
    %59 = vector.broadcast %58 : vector<1x128xf32> to vector<16x128xf32>
    %60 = arith.mulf %57, %59 : vector<16x128xf32>
    %c1 = arith.constant 1 : index
    %c0_15 = arith.constant 0 : index
    %61 = vector.load %arg4[%c1, %c0_15] : memref<32x128xf32, #tpu.memory_space<vmem>>, vector<1x128xf32>
    %62 = vector.broadcast %61 : vector<1x128xf32> to vector<16x128xf32>
    %63 = arith.addf %60, %62 : vector<16x128xf32>
    %64 = tpu.iota {dimensions = array<i32: 0>} : vector<16x16xi32>
    %65 = tpu.iota {dimensions = array<i32: 1>} : vector<16x16xi32>
    %c0_i32_16 = arith.constant 0 : i32
    %66 = vector.broadcast %c0_i32_16 : i32 to vector<16x16xi32>
    %67 = arith.cmpi sge, %64, %66 : vector<16x16xi32>
    %c8_i32_17 = arith.constant 8 : i32
    %68 = vector.broadcast %c8_i32_17 : i32 to vector<16x16xi32>
    %69 = arith.cmpi slt, %64, %68 : vector<16x16xi32>
    %70 = arith.andi %67, %69 : vector<16x16xi1>
    %c0_i32_18 = arith.constant 0 : i32
    %71 = vector.broadcast %c0_i32_18 : i32 to vector<16x16xi32>
    %72 = arith.cmpi sge, %65, %71 : vector<16x16xi32>
    %73 = arith.andi %70, %72 : vector<16x16xi1>
    %c8_i32_19 = arith.constant 8 : i32
    %74 = vector.broadcast %c8_i32_19 : i32 to vector<16x16xi32>
    %75 = arith.cmpi slt, %65, %74 : vector<16x16xi32>
    %76 = arith.andi %73, %75 : vector<16x16xi1>
    %c8_i32_20 = arith.constant 8 : i32
    %77 = vector.broadcast %c8_i32_20 : i32 to vector<16x16xi32>
    %78 = arith.cmpi sge, %64, %77 : vector<16x16xi32>
    %c16_i32_21 = arith.constant 16 : i32
    %79 = vector.broadcast %c16_i32_21 : i32 to vector<16x16xi32>
    %80 = arith.cmpi slt, %64, %79 : vector<16x16xi32>
    %81 = arith.andi %78, %80 : vector<16x16xi1>
    %c8_i32_22 = arith.constant 8 : i32
    %82 = vector.broadcast %c8_i32_22 : i32 to vector<16x16xi32>
    %83 = arith.cmpi sge, %65, %82 : vector<16x16xi32>
    %84 = arith.andi %81, %83 : vector<16x16xi1>
    %c16_i32_23 = arith.constant 16 : i32
    %85 = vector.broadcast %c16_i32_23 : i32 to vector<16x16xi32>
    %86 = arith.cmpi slt, %65, %85 : vector<16x16xi32>
    %87 = arith.andi %84, %86 : vector<16x16xi1>
    %88 = arith.ori %76, %87 : vector<16x16xi1>
    %c0_24 = arith.constant 0 : index
    %c0_25 = arith.constant 0 : index
    %89 = vector.load %arg1[%c0_24, %c0_25] : memref<1x16xf32, #tpu.memory_space<vmem>>, vector<1x16xf32>
    %cst_26 = arith.constant 0.000000e+00 : f32
    %90 = vector.broadcast %cst_26 : f32 to vector<1x16xf32>
    %91 = arith.cmpf ogt, %89, %90 : vector<1x16xf32>
    %92 = vector.broadcast %91 : vector<1x16xi1> to vector<16x16xi1>
    %93 = arith.andi %88, %92 : vector<16x16xi1>
    %cst_27 = arith.constant 0.000000e+00 : f32
    %cst_28 = arith.constant -1.000000e+09 : f32
    %94 = vector.broadcast %cst_27 : f32 to vector<16x16xf32>
    %95 = vector.broadcast %cst_28 : f32 to vector<16x16xf32>
    %96 = arith.select %93, %94, %95 : vector<16x16xi1>, vector<16x16xf32>
    %c0_i32_29 = arith.constant 0 : i32
    %97 = vector.broadcast %c0_i32_29 : i32 to vector<1x128xi32>
    %98 = arith.cmpi sge, %0, %97 : vector<1x128xi32>
    %c32_i32 = arith.constant 32 : i32
    %99 = vector.broadcast %c32_i32 : i32 to vector<1x128xi32>
    %100 = arith.cmpi slt, %0, %99 : vector<1x128xi32>
    %101 = arith.andi %98, %100 : vector<1x128xi1>
    %102 = arith.extui %101 : vector<1x128xi1> to vector<1x128xi32>
    %103 = arith.sitofp %102 : vector<1x128xi32> to vector<1x128xf32>
    %c32_i32_30 = arith.constant 32 : i32
    %104 = vector.broadcast %c32_i32_30 : i32 to vector<1x128xi32>
    %105 = arith.cmpi sge, %0, %104 : vector<1x128xi32>
    %c64_i32_31 = arith.constant 64 : i32
    %106 = vector.broadcast %c64_i32_31 : i32 to vector<1x128xi32>
    %107 = arith.cmpi slt, %0, %106 : vector<1x128xi32>
    %108 = arith.andi %105, %107 : vector<1x128xi1>
    %109 = arith.extui %108 : vector<1x128xi1> to vector<1x128xi32>
    %110 = arith.sitofp %109 : vector<1x128xi32> to vector<1x128xf32>
    %111 = arith.truncf %63 : vector<16x128xf32> to vector<16x128xbf16>
    %c0_32 = arith.constant 0 : index
    %c0_33 = arith.constant 0 : index
    %c0_34 = arith.constant 0 : index
    %112 = vector.load %arg2[%c0_32, %c0_33, %c0_34] : memref<2x128x768xbf16, #tpu.memory_space<vmem>>, vector<1x128x384xbf16>
    %113 = vector.shape_cast %112 : vector<1x128x384xbf16> to vector<128x384xbf16>
    %cst_35 = arith.constant dense<0.000000e+00> : vector<16x384xf32>
    %114 = tpu.matmul %111, %113, %cst_35 {dimension_numbers = #tpu.dot_dimension_numbers<[1], [0], [0], [1], [0, 0, 1, 1], [], []>} : vector<16x128xbf16>, vector<128x384xbf16>, vector<16x384xf32> -> vector<16x384xf32>
    %115 = vector.extract_strided_slice %114 {offsets = [0, 0], sizes = [16, 128], strides = [1, 1]} : vector<16x384xf32> to vector<16x128xf32>
    %c2 = arith.constant 2 : index
    %c0_36 = arith.constant 0 : index
    %116 = vector.load %arg4[%c2, %c0_36] : memref<32x128xf32, #tpu.memory_space<vmem>>, vector<1x128xf32>
    %117 = vector.broadcast %116 : vector<1x128xf32> to vector<16x128xf32>
    %118 = arith.addf %115, %117 : vector<16x128xf32>
    %119 = vector.extract_strided_slice %114 {offsets = [0, 128], sizes = [16, 128], strides = [1, 1]} : vector<16x384xf32> to vector<16x128xf32>
    %c3 = arith.constant 3 : index
    %c0_37 = arith.constant 0 : index
    %120 = vector.load %arg4[%c3, %c0_37] : memref<32x128xf32, #tpu.memory_space<vmem>>, vector<1x128xf32>
    %121 = vector.broadcast %120 : vector<1x128xf32> to vector<16x128xf32>
    %122 = arith.addf %119, %121 : vector<16x128xf32>
    %123 = arith.truncf %122 : vector<16x128xf32> to vector<16x128xbf16>
    %124 = vector.extract_strided_slice %114 {offsets = [0, 256], sizes = [16, 128], strides = [1, 1]} : vector<16x384xf32> to vector<16x128xf32>
    %c4 = arith.constant 4 : index
    %c0_38 = arith.constant 0 : index
    %125 = vector.load %arg4[%c4, %c0_38] : memref<32x128xf32, #tpu.memory_space<vmem>>, vector<1x128xf32>
    %126 = vector.broadcast %125 : vector<1x128xf32> to vector<16x128xf32>
    %127 = arith.addf %124, %126 : vector<16x128xf32>
    %128 = vector.broadcast %103 : vector<1x128xf32> to vector<16x128xf32>
    %129 = arith.mulf %118, %128 : vector<16x128xf32>
    %130 = arith.truncf %129 : vector<16x128xf32> to vector<16x128xbf16>
    %cst_39 = arith.constant dense<0.000000e+00> : vector<16x16xf32>
    %131 = tpu.matmul %130, %123, %cst_39 {dimension_numbers = #tpu.dot_dimension_numbers<[1], [1], [0], [0], [0, 0, 1, 0], [], []>} : vector<16x128xbf16>, vector<16x128xbf16>, vector<16x16xf32> -> vector<16x16xf32>
    %132 = arith.addf %131, %96 : vector<16x16xf32>
    %cst_40 = arith.constant dense<0xFF800000> : vector<16xf32>
    %133 = vector.multi_reduction <maximumf>, %132, %cst_40 [1] : vector<16x16xf32> to vector<16xf32>
    %134 = vector.shape_cast %133 : vector<16xf32> to vector<16x1xf32>
    %135 = vector.broadcast %134 : vector<16x1xf32> to vector<16x16xf32>
    %136 = arith.subf %132, %135 : vector<16x16xf32>
    %137 = math.exp %136 : vector<16x16xf32>
    %cst_41 = arith.constant dense<0.000000e+00> : vector<16xf32>
    %138 = vector.multi_reduction <add>, %137, %cst_41 [1] : vector<16x16xf32> to vector<16xf32>
    %139 = vector.shape_cast %138 : vector<16xf32> to vector<16x1xf32>
    %140 = tpu.reciprocal %139 {approx = true} : vector<16x1xf32> -> vector<16x1xf32>
    %141 = vector.broadcast %140 : vector<16x1xf32> to vector<16x16xf32>
    %142 = arith.mulf %137, %141 : vector<16x16xf32>
    %143 = arith.truncf %142 : vector<16x16xf32> to vector<16x16xbf16>
    %144 = vector.broadcast %103 : vector<1x128xf32> to vector<16x128xf32>
    %145 = arith.mulf %127, %144 : vector<16x128xf32>
    %146 = arith.truncf %145 : vector<16x128xf32> to vector<16x128xbf16>
    %cst_42 = arith.constant dense<0.000000e+00> : vector<16x128xf32>
    %147 = tpu.matmul %143, %146, %cst_42 {dimension_numbers = #tpu.dot_dimension_numbers<[1], [0], [0], [1], [0, 0, 1, 1], [], []>} : vector<16x16xbf16>, vector<16x128xbf16>, vector<16x128xf32> -> vector<16x128xf32>
    %148 = vector.broadcast %110 : vector<1x128xf32> to vector<16x128xf32>
    %149 = arith.mulf %118, %148 : vector<16x128xf32>
    %150 = arith.truncf %149 : vector<16x128xf32> to vector<16x128xbf16>
    %cst_43 = arith.constant dense<0.000000e+00> : vector<16x16xf32>
    %151 = tpu.matmul %150, %123, %cst_43 {dimension_numbers = #tpu.dot_dimension_numbers<[1], [1], [0], [0], [0, 0, 1, 0], [], []>} : vector<16x128xbf16>, vector<16x128xbf16>, vector<16x16xf32> -> vector<16x16xf32>
    %152 = arith.addf %151, %96 : vector<16x16xf32>
    %cst_44 = arith.constant dense<0xFF800000> : vector<16xf32>
    %153 = vector.multi_reduction <maximumf>, %152, %cst_44 [1] : vector<16x16xf32> to vector<16xf32>
    %154 = vector.shape_cast %153 : vector<16xf32> to vector<16x1xf32>
    %155 = vector.broadcast %154 : vector<16x1xf32> to vector<16x16xf32>
    %156 = arith.subf %152, %155 : vector<16x16xf32>
    %157 = math.exp %156 : vector<16x16xf32>
    %cst_45 = arith.constant dense<0.000000e+00> : vector<16xf32>
    %158 = vector.multi_reduction <add>, %157, %cst_45 [1] : vector<16x16xf32> to vector<16xf32>
    %159 = vector.shape_cast %158 : vector<16xf32> to vector<16x1xf32>
    %160 = tpu.reciprocal %159 {approx = true} : vector<16x1xf32> -> vector<16x1xf32>
    %161 = vector.broadcast %160 : vector<16x1xf32> to vector<16x16xf32>
    %162 = arith.mulf %157, %161 : vector<16x16xf32>
    %163 = arith.truncf %162 : vector<16x16xf32> to vector<16x16xbf16>
    %164 = vector.broadcast %110 : vector<1x128xf32> to vector<16x128xf32>
    %165 = arith.mulf %127, %164 : vector<16x128xf32>
    %166 = arith.truncf %165 : vector<16x128xf32> to vector<16x128xbf16>
    %cst_46 = arith.constant dense<0.000000e+00> : vector<16x128xf32>
    %167 = tpu.matmul %163, %166, %cst_46 {dimension_numbers = #tpu.dot_dimension_numbers<[1], [0], [0], [1], [0, 0, 1, 1], [], []>} : vector<16x16xbf16>, vector<16x128xbf16>, vector<16x128xf32> -> vector<16x128xf32>
    %168 = arith.addf %147, %167 : vector<16x128xf32>
    %169 = arith.truncf %168 : vector<16x128xf32> to vector<16x128xbf16>
    %c0_47 = arith.constant 0 : index
    %c0_48 = arith.constant 0 : index
    %c384 = arith.constant 384 : index
    %170 = vector.load %arg2[%c0_47, %c0_48, %c384] : memref<2x128x768xbf16, #tpu.memory_space<vmem>>, vector<1x128x128xbf16>
    %171 = vector.shape_cast %170 : vector<1x128x128xbf16> to vector<128x128xbf16>
    %cst_49 = arith.constant dense<0.000000e+00> : vector<16x128xf32>
    %172 = tpu.matmul %169, %171, %cst_49 {dimension_numbers = #tpu.dot_dimension_numbers<[1], [0], [0], [1], [0, 0, 1, 1], [], []>} : vector<16x128xbf16>, vector<128x128xbf16>, vector<16x128xf32> -> vector<16x128xf32>
    %c5 = arith.constant 5 : index
    %c0_50 = arith.constant 0 : index
    %173 = vector.load %arg4[%c5, %c0_50] : memref<32x128xf32, #tpu.memory_space<vmem>>, vector<1x128xf32>
    %174 = vector.broadcast %173 : vector<1x128xf32> to vector<16x128xf32>
    %175 = arith.addf %172, %174 : vector<16x128xf32>
    %176 = arith.addf %175, %63 : vector<16x128xf32>
    %cst_51 = arith.constant dense<0.000000e+00> : vector<16xf32>
    %177 = vector.multi_reduction <add>, %176, %cst_51 [1] : vector<16x128xf32> to vector<16xf32>
    %178 = vector.shape_cast %177 : vector<16xf32> to vector<16x1xf32>
    %cst_52 = arith.constant 1.562500e-02 : f32
    %179 = vector.broadcast %cst_52 : f32 to vector<16x1xf32>
    %180 = arith.mulf %178, %179 : vector<16x1xf32>
    %181 = vector.broadcast %180 : vector<16x1xf32> to vector<16x128xf32>
    %182 = arith.subf %176, %181 : vector<16x128xf32>
    %183 = vector.broadcast %4 : vector<1x128xf32> to vector<16x128xf32>
    %184 = arith.mulf %182, %183 : vector<16x128xf32>
    %185 = arith.mulf %184, %184 : vector<16x128xf32>
    %cst_53 = arith.constant dense<0.000000e+00> : vector<16xf32>
    %186 = vector.multi_reduction <add>, %185, %cst_53 [1] : vector<16x128xf32> to vector<16xf32>
    %187 = vector.shape_cast %186 : vector<16xf32> to vector<16x1xf32>
    %cst_54 = arith.constant 1.562500e-02 : f32
    %188 = vector.broadcast %cst_54 : f32 to vector<16x1xf32>
    %189 = arith.mulf %187, %188 : vector<16x1xf32>
    %cst_55 = arith.constant 9.99999996E-13 : f32
    %190 = vector.broadcast %cst_55 : f32 to vector<16x1xf32>
    %191 = arith.addf %189, %190 : vector<16x1xf32>
    %192 = math.rsqrt %191 : vector<16x1xf32>
    %193 = vector.broadcast %192 : vector<16x1xf32> to vector<16x128xf32>
    %194 = arith.mulf %184, %193 : vector<16x128xf32>
    %c6 = arith.constant 6 : index
    %c0_56 = arith.constant 0 : index
    %195 = vector.load %arg4[%c6, %c0_56] : memref<32x128xf32, #tpu.memory_space<vmem>>, vector<1x128xf32>
    %196 = vector.broadcast %195 : vector<1x128xf32> to vector<16x128xf32>
    %197 = arith.mulf %194, %196 : vector<16x128xf32>
    %c7 = arith.constant 7 : index
    %c0_57 = arith.constant 0 : index
    %198 = vector.load %arg4[%c7, %c0_57] : memref<32x128xf32, #tpu.memory_space<vmem>>, vector<1x128xf32>
    %199 = vector.broadcast %198 : vector<1x128xf32> to vector<16x128xf32>
    %200 = arith.addf %197, %199 : vector<16x128xf32>
    %201 = arith.truncf %200 : vector<16x128xf32> to vector<16x128xbf16>
    %c0_58 = arith.constant 0 : index
    %c0_59 = arith.constant 0 : index
    %c512 = arith.constant 512 : index
    %202 = vector.load %arg2[%c0_58, %c0_59, %c512] : memref<2x128x768xbf16, #tpu.memory_space<vmem>>, vector<1x128x128xbf16>
    %203 = vector.shape_cast %202 : vector<1x128x128xbf16> to vector<128x128xbf16>
    %cst_60 = arith.constant dense<0.000000e+00> : vector<16x128xf32>
    %204 = tpu.matmul %201, %203, %cst_60 {dimension_numbers = #tpu.dot_dimension_numbers<[1], [0], [0], [1], [0, 0, 1, 1], [], []>} : vector<16x128xbf16>, vector<128x128xbf16>, vector<16x128xf32> -> vector<16x128xf32>
    %c8 = arith.constant 8 : index
    %c0_61 = arith.constant 0 : index
    %205 = vector.load %arg4[%c8, %c0_61] : memref<32x128xf32, #tpu.memory_space<vmem>>, vector<1x128xf32>
    %206 = vector.broadcast %205 : vector<1x128xf32> to vector<16x128xf32>
    %207 = arith.addf %204, %206 : vector<16x128xf32>
    %cst_62 = arith.constant 5.000000e-01 : f32
    %208 = vector.broadcast %cst_62 : f32 to vector<16x128xf32>
    %209 = arith.mulf %208, %207 : vector<16x128xf32>
    %cst_63 = arith.constant 0.707106769 : f32
    %210 = vector.broadcast %cst_63 : f32 to vector<16x128xf32>
    %211 = arith.mulf %207, %210 : vector<16x128xf32>
    %212 = math.erf %211 : vector<16x128xf32>
    %cst_64 = arith.constant 1.000000e+00 : f32
    %213 = vector.broadcast %cst_64 : f32 to vector<16x128xf32>
    %214 = arith.addf %213, %212 : vector<16x128xf32>
    %215 = arith.mulf %209, %214 : vector<16x128xf32>
    %216 = arith.truncf %215 : vector<16x128xf32> to vector<16x128xbf16>
    %c0_65 = arith.constant 0 : index
    %c0_66 = arith.constant 0 : index
    %c640 = arith.constant 640 : index
    %217 = vector.load %arg2[%c0_65, %c0_66, %c640] : memref<2x128x768xbf16, #tpu.memory_space<vmem>>, vector<1x128x128xbf16>
    %218 = vector.shape_cast %217 : vector<1x128x128xbf16> to vector<128x128xbf16>
    %cst_67 = arith.constant dense<0.000000e+00> : vector<16x128xf32>
    %219 = tpu.matmul %216, %218, %cst_67 {dimension_numbers = #tpu.dot_dimension_numbers<[1], [0], [0], [1], [0, 0, 1, 1], [], []>} : vector<16x128xbf16>, vector<128x128xbf16>, vector<16x128xf32> -> vector<16x128xf32>
    %c9 = arith.constant 9 : index
    %c0_68 = arith.constant 0 : index
    %220 = vector.load %arg4[%c9, %c0_68] : memref<32x128xf32, #tpu.memory_space<vmem>>, vector<1x128xf32>
    %221 = vector.broadcast %220 : vector<1x128xf32> to vector<16x128xf32>
    %222 = arith.addf %219, %221 : vector<16x128xf32>
    %223 = arith.addf %222, %200 : vector<16x128xf32>
    %cst_69 = arith.constant dense<0.000000e+00> : vector<16xf32>
    %224 = vector.multi_reduction <add>, %223, %cst_69 [1] : vector<16x128xf32> to vector<16xf32>
    %225 = vector.shape_cast %224 : vector<16xf32> to vector<16x1xf32>
    %cst_70 = arith.constant 1.562500e-02 : f32
    %226 = vector.broadcast %cst_70 : f32 to vector<16x1xf32>
    %227 = arith.mulf %225, %226 : vector<16x1xf32>
    %228 = vector.broadcast %227 : vector<16x1xf32> to vector<16x128xf32>
    %229 = arith.subf %223, %228 : vector<16x128xf32>
    %230 = vector.broadcast %4 : vector<1x128xf32> to vector<16x128xf32>
    %231 = arith.mulf %229, %230 : vector<16x128xf32>
    %232 = arith.mulf %231, %231 : vector<16x128xf32>
    %cst_71 = arith.constant dense<0.000000e+00> : vector<16xf32>
    %233 = vector.multi_reduction <add>, %232, %cst_71 [1] : vector<16x128xf32> to vector<16xf32>
    %234 = vector.shape_cast %233 : vector<16xf32> to vector<16x1xf32>
    %cst_72 = arith.constant 1.562500e-02 : f32
    %235 = vector.broadcast %cst_72 : f32 to vector<16x1xf32>
    %236 = arith.mulf %234, %235 : vector<16x1xf32>
    %cst_73 = arith.constant 9.99999996E-13 : f32
    %237 = vector.broadcast %cst_73 : f32 to vector<16x1xf32>
    %238 = arith.addf %236, %237 : vector<16x1xf32>
    %239 = math.rsqrt %238 : vector<16x1xf32>
    %240 = vector.broadcast %239 : vector<16x1xf32> to vector<16x128xf32>
    %241 = arith.mulf %231, %240 : vector<16x128xf32>
    %c10 = arith.constant 10 : index
    %c0_74 = arith.constant 0 : index
    %242 = vector.load %arg4[%c10, %c0_74] : memref<32x128xf32, #tpu.memory_space<vmem>>, vector<1x128xf32>
    %243 = vector.broadcast %242 : vector<1x128xf32> to vector<16x128xf32>
    %244 = arith.mulf %241, %243 : vector<16x128xf32>
    %c11 = arith.constant 11 : index
    %c0_75 = arith.constant 0 : index
    %245 = vector.load %arg4[%c11, %c0_75] : memref<32x128xf32, #tpu.memory_space<vmem>>, vector<1x128xf32>
    %246 = vector.broadcast %245 : vector<1x128xf32> to vector<16x128xf32>
    %247 = arith.addf %244, %246 : vector<16x128xf32>
    %248 = arith.truncf %247 : vector<16x128xf32> to vector<16x128xbf16>
    %c1_76 = arith.constant 1 : index
    %c0_77 = arith.constant 0 : index
    %c0_78 = arith.constant 0 : index
    %249 = vector.load %arg2[%c1_76, %c0_77, %c0_78] : memref<2x128x768xbf16, #tpu.memory_space<vmem>>, vector<1x128x384xbf16>
    %250 = vector.shape_cast %249 : vector<1x128x384xbf16> to vector<128x384xbf16>
    %cst_79 = arith.constant dense<0.000000e+00> : vector<16x384xf32>
    %251 = tpu.matmul %248, %250, %cst_79 {dimension_numbers = #tpu.dot_dimension_numbers<[1], [0], [0], [1], [0, 0, 1, 1], [], []>} : vector<16x128xbf16>, vector<128x384xbf16>, vector<16x384xf32> -> vector<16x384xf32>
    %252 = vector.extract_strided_slice %251 {offsets = [0, 0], sizes = [16, 128], strides = [1, 1]} : vector<16x384xf32> to vector<16x128xf32>
    %c12 = arith.constant 12 : index
    %c0_80 = arith.constant 0 : index
    %253 = vector.load %arg4[%c12, %c0_80] : memref<32x128xf32, #tpu.memory_space<vmem>>, vector<1x128xf32>
    %254 = vector.broadcast %253 : vector<1x128xf32> to vector<16x128xf32>
    %255 = arith.addf %252, %254 : vector<16x128xf32>
    %256 = vector.extract_strided_slice %251 {offsets = [0, 128], sizes = [16, 128], strides = [1, 1]} : vector<16x384xf32> to vector<16x128xf32>
    %c13 = arith.constant 13 : index
    %c0_81 = arith.constant 0 : index
    %257 = vector.load %arg4[%c13, %c0_81] : memref<32x128xf32, #tpu.memory_space<vmem>>, vector<1x128xf32>
    %258 = vector.broadcast %257 : vector<1x128xf32> to vector<16x128xf32>
    %259 = arith.addf %256, %258 : vector<16x128xf32>
    %260 = arith.truncf %259 : vector<16x128xf32> to vector<16x128xbf16>
    %261 = vector.extract_strided_slice %251 {offsets = [0, 256], sizes = [16, 128], strides = [1, 1]} : vector<16x384xf32> to vector<16x128xf32>
    %c14 = arith.constant 14 : index
    %c0_82 = arith.constant 0 : index
    %262 = vector.load %arg4[%c14, %c0_82] : memref<32x128xf32, #tpu.memory_space<vmem>>, vector<1x128xf32>
    %263 = vector.broadcast %262 : vector<1x128xf32> to vector<16x128xf32>
    %264 = arith.addf %261, %263 : vector<16x128xf32>
    %265 = vector.broadcast %103 : vector<1x128xf32> to vector<16x128xf32>
    %266 = arith.mulf %255, %265 : vector<16x128xf32>
    %267 = arith.truncf %266 : vector<16x128xf32> to vector<16x128xbf16>
    %cst_83 = arith.constant dense<0.000000e+00> : vector<16x16xf32>
    %268 = tpu.matmul %267, %260, %cst_83 {dimension_numbers = #tpu.dot_dimension_numbers<[1], [1], [0], [0], [0, 0, 1, 0], [], []>} : vector<16x128xbf16>, vector<16x128xbf16>, vector<16x16xf32> -> vector<16x16xf32>
    %269 = arith.addf %268, %96 : vector<16x16xf32>
    %cst_84 = arith.constant dense<0xFF800000> : vector<16xf32>
    %270 = vector.multi_reduction <maximumf>, %269, %cst_84 [1] : vector<16x16xf32> to vector<16xf32>
    %271 = vector.shape_cast %270 : vector<16xf32> to vector<16x1xf32>
    %272 = vector.broadcast %271 : vector<16x1xf32> to vector<16x16xf32>
    %273 = arith.subf %269, %272 : vector<16x16xf32>
    %274 = math.exp %273 : vector<16x16xf32>
    %cst_85 = arith.constant dense<0.000000e+00> : vector<16xf32>
    %275 = vector.multi_reduction <add>, %274, %cst_85 [1] : vector<16x16xf32> to vector<16xf32>
    %276 = vector.shape_cast %275 : vector<16xf32> to vector<16x1xf32>
    %277 = tpu.reciprocal %276 {approx = true} : vector<16x1xf32> -> vector<16x1xf32>
    %278 = vector.broadcast %277 : vector<16x1xf32> to vector<16x16xf32>
    %279 = arith.mulf %274, %278 : vector<16x16xf32>
    %280 = arith.truncf %279 : vector<16x16xf32> to vector<16x16xbf16>
    %281 = vector.broadcast %103 : vector<1x128xf32> to vector<16x128xf32>
    %282 = arith.mulf %264, %281 : vector<16x128xf32>
    %283 = arith.truncf %282 : vector<16x128xf32> to vector<16x128xbf16>
    %cst_86 = arith.constant dense<0.000000e+00> : vector<16x128xf32>
    %284 = tpu.matmul %280, %283, %cst_86 {dimension_numbers = #tpu.dot_dimension_numbers<[1], [0], [0], [1], [0, 0, 1, 1], [], []>} : vector<16x16xbf16>, vector<16x128xbf16>, vector<16x128xf32> -> vector<16x128xf32>
    %285 = vector.broadcast %110 : vector<1x128xf32> to vector<16x128xf32>
    %286 = arith.mulf %255, %285 : vector<16x128xf32>
    %287 = arith.truncf %286 : vector<16x128xf32> to vector<16x128xbf16>
    %cst_87 = arith.constant dense<0.000000e+00> : vector<16x16xf32>
    %288 = tpu.matmul %287, %260, %cst_87 {dimension_numbers = #tpu.dot_dimension_numbers<[1], [1], [0], [0], [0, 0, 1, 0], [], []>} : vector<16x128xbf16>, vector<16x128xbf16>, vector<16x16xf32> -> vector<16x16xf32>
    %289 = arith.addf %288, %96 : vector<16x16xf32>
    %cst_88 = arith.constant dense<0xFF800000> : vector<16xf32>
    %290 = vector.multi_reduction <maximumf>, %289, %cst_88 [1] : vector<16x16xf32> to vector<16xf32>
    %291 = vector.shape_cast %290 : vector<16xf32> to vector<16x1xf32>
    %292 = vector.broadcast %291 : vector<16x1xf32> to vector<16x16xf32>
    %293 = arith.subf %289, %292 : vector<16x16xf32>
    %294 = math.exp %293 : vector<16x16xf32>
    %cst_89 = arith.constant dense<0.000000e+00> : vector<16xf32>
    %295 = vector.multi_reduction <add>, %294, %cst_89 [1] : vector<16x16xf32> to vector<16xf32>
    %296 = vector.shape_cast %295 : vector<16xf32> to vector<16x1xf32>
    %297 = tpu.reciprocal %296 {approx = true} : vector<16x1xf32> -> vector<16x1xf32>
    %298 = vector.broadcast %297 : vector<16x1xf32> to vector<16x16xf32>
    %299 = arith.mulf %294, %298 : vector<16x16xf32>
    %300 = arith.truncf %299 : vector<16x16xf32> to vector<16x16xbf16>
    %301 = vector.broadcast %110 : vector<1x128xf32> to vector<16x128xf32>
    %302 = arith.mulf %264, %301 : vector<16x128xf32>
    %303 = arith.truncf %302 : vector<16x128xf32> to vector<16x128xbf16>
    %cst_90 = arith.constant dense<0.000000e+00> : vector<16x128xf32>
    %304 = tpu.matmul %300, %303, %cst_90 {dimension_numbers = #tpu.dot_dimension_numbers<[1], [0], [0], [1], [0, 0, 1, 1], [], []>} : vector<16x16xbf16>, vector<16x128xbf16>, vector<16x128xf32> -> vector<16x128xf32>
    %305 = arith.addf %284, %304 : vector<16x128xf32>
    %306 = arith.truncf %305 : vector<16x128xf32> to vector<16x128xbf16>
    %c1_91 = arith.constant 1 : index
    %c0_92 = arith.constant 0 : index
    %c384_93 = arith.constant 384 : index
    %307 = vector.load %arg2[%c1_91, %c0_92, %c384_93] : memref<2x128x768xbf16, #tpu.memory_space<vmem>>, vector<1x128x128xbf16>
    %308 = vector.shape_cast %307 : vector<1x128x128xbf16> to vector<128x128xbf16>
    %cst_94 = arith.constant dense<0.000000e+00> : vector<16x128xf32>
    %309 = tpu.matmul %306, %308, %cst_94 {dimension_numbers = #tpu.dot_dimension_numbers<[1], [0], [0], [1], [0, 0, 1, 1], [], []>} : vector<16x128xbf16>, vector<128x128xbf16>, vector<16x128xf32> -> vector<16x128xf32>
    %c15 = arith.constant 15 : index
    %c0_95 = arith.constant 0 : index
    %310 = vector.load %arg4[%c15, %c0_95] : memref<32x128xf32, #tpu.memory_space<vmem>>, vector<1x128xf32>
    %311 = vector.broadcast %310 : vector<1x128xf32> to vector<16x128xf32>
    %312 = arith.addf %309, %311 : vector<16x128xf32>
    %313 = arith.addf %312, %247 : vector<16x128xf32>
    %cst_96 = arith.constant dense<0.000000e+00> : vector<16xf32>
    %314 = vector.multi_reduction <add>, %313, %cst_96 [1] : vector<16x128xf32> to vector<16xf32>
    %315 = vector.shape_cast %314 : vector<16xf32> to vector<16x1xf32>
    %cst_97 = arith.constant 1.562500e-02 : f32
    %316 = vector.broadcast %cst_97 : f32 to vector<16x1xf32>
    %317 = arith.mulf %315, %316 : vector<16x1xf32>
    %318 = vector.broadcast %317 : vector<16x1xf32> to vector<16x128xf32>
    %319 = arith.subf %313, %318 : vector<16x128xf32>
    %320 = vector.broadcast %4 : vector<1x128xf32> to vector<16x128xf32>
    %321 = arith.mulf %319, %320 : vector<16x128xf32>
    %322 = arith.mulf %321, %321 : vector<16x128xf32>
    %cst_98 = arith.constant dense<0.000000e+00> : vector<16xf32>
    %323 = vector.multi_reduction <add>, %322, %cst_98 [1] : vector<16x128xf32> to vector<16xf32>
    %324 = vector.shape_cast %323 : vector<16xf32> to vector<16x1xf32>
    %cst_99 = arith.constant 1.562500e-02 : f32
    %325 = vector.broadcast %cst_99 : f32 to vector<16x1xf32>
    %326 = arith.mulf %324, %325 : vector<16x1xf32>
    %cst_100 = arith.constant 9.99999996E-13 : f32
    %327 = vector.broadcast %cst_100 : f32 to vector<16x1xf32>
    %328 = arith.addf %326, %327 : vector<16x1xf32>
    %329 = math.rsqrt %328 : vector<16x1xf32>
    %330 = vector.broadcast %329 : vector<16x1xf32> to vector<16x128xf32>
    %331 = arith.mulf %321, %330 : vector<16x128xf32>
    %c16 = arith.constant 16 : index
    %c0_101 = arith.constant 0 : index
    %332 = vector.load %arg4[%c16, %c0_101] : memref<32x128xf32, #tpu.memory_space<vmem>>, vector<1x128xf32>
    %333 = vector.broadcast %332 : vector<1x128xf32> to vector<16x128xf32>
    %334 = arith.mulf %331, %333 : vector<16x128xf32>
    %c17 = arith.constant 17 : index
    %c0_102 = arith.constant 0 : index
    %335 = vector.load %arg4[%c17, %c0_102] : memref<32x128xf32, #tpu.memory_space<vmem>>, vector<1x128xf32>
    %336 = vector.broadcast %335 : vector<1x128xf32> to vector<16x128xf32>
    %337 = arith.addf %334, %336 : vector<16x128xf32>
    %338 = arith.truncf %337 : vector<16x128xf32> to vector<16x128xbf16>
    %c1_103 = arith.constant 1 : index
    %c0_104 = arith.constant 0 : index
    %c512_105 = arith.constant 512 : index
    %339 = vector.load %arg2[%c1_103, %c0_104, %c512_105] : memref<2x128x768xbf16, #tpu.memory_space<vmem>>, vector<1x128x128xbf16>
    %340 = vector.shape_cast %339 : vector<1x128x128xbf16> to vector<128x128xbf16>
    %cst_106 = arith.constant dense<0.000000e+00> : vector<16x128xf32>
    %341 = tpu.matmul %338, %340, %cst_106 {dimension_numbers = #tpu.dot_dimension_numbers<[1], [0], [0], [1], [0, 0, 1, 1], [], []>} : vector<16x128xbf16>, vector<128x128xbf16>, vector<16x128xf32> -> vector<16x128xf32>
    %c18 = arith.constant 18 : index
    %c0_107 = arith.constant 0 : index
    %342 = vector.load %arg4[%c18, %c0_107] : memref<32x128xf32, #tpu.memory_space<vmem>>, vector<1x128xf32>
    %343 = vector.broadcast %342 : vector<1x128xf32> to vector<16x128xf32>
    %344 = arith.addf %341, %343 : vector<16x128xf32>
    %cst_108 = arith.constant 5.000000e-01 : f32
    %345 = vector.broadcast %cst_108 : f32 to vector<16x128xf32>
    %346 = arith.mulf %345, %344 : vector<16x128xf32>
    %cst_109 = arith.constant 0.707106769 : f32
    %347 = vector.broadcast %cst_109 : f32 to vector<16x128xf32>
    %348 = arith.mulf %344, %347 : vector<16x128xf32>
    %349 = math.erf %348 : vector<16x128xf32>
    %cst_110 = arith.constant 1.000000e+00 : f32
    %350 = vector.broadcast %cst_110 : f32 to vector<16x128xf32>
    %351 = arith.addf %350, %349 : vector<16x128xf32>
    %352 = arith.mulf %346, %351 : vector<16x128xf32>
    %353 = arith.truncf %352 : vector<16x128xf32> to vector<16x128xbf16>
    %c1_111 = arith.constant 1 : index
    %c0_112 = arith.constant 0 : index
    %c640_113 = arith.constant 640 : index
    %354 = vector.load %arg2[%c1_111, %c0_112, %c640_113] : memref<2x128x768xbf16, #tpu.memory_space<vmem>>, vector<1x128x128xbf16>
    %355 = vector.shape_cast %354 : vector<1x128x128xbf16> to vector<128x128xbf16>
    %cst_114 = arith.constant dense<0.000000e+00> : vector<16x128xf32>
    %356 = tpu.matmul %353, %355, %cst_114 {dimension_numbers = #tpu.dot_dimension_numbers<[1], [0], [0], [1], [0, 0, 1, 1], [], []>} : vector<16x128xbf16>, vector<128x128xbf16>, vector<16x128xf32> -> vector<16x128xf32>
    %c19 = arith.constant 19 : index
    %c0_115 = arith.constant 0 : index
    %357 = vector.load %arg4[%c19, %c0_115] : memref<32x128xf32, #tpu.memory_space<vmem>>, vector<1x128xf32>
    %358 = vector.broadcast %357 : vector<1x128xf32> to vector<16x128xf32>
    %359 = arith.addf %356, %358 : vector<16x128xf32>
    %360 = arith.addf %359, %337 : vector<16x128xf32>
    %cst_116 = arith.constant dense<0.000000e+00> : vector<16xf32>
    %361 = vector.multi_reduction <add>, %360, %cst_116 [1] : vector<16x128xf32> to vector<16xf32>
    %362 = vector.shape_cast %361 : vector<16xf32> to vector<16x1xf32>
    %cst_117 = arith.constant 1.562500e-02 : f32
    %363 = vector.broadcast %cst_117 : f32 to vector<16x1xf32>
    %364 = arith.mulf %362, %363 : vector<16x1xf32>
    %365 = vector.broadcast %364 : vector<16x1xf32> to vector<16x128xf32>
    %366 = arith.subf %360, %365 : vector<16x128xf32>
    %367 = vector.broadcast %4 : vector<1x128xf32> to vector<16x128xf32>
    %368 = arith.mulf %366, %367 : vector<16x128xf32>
    %369 = arith.mulf %368, %368 : vector<16x128xf32>
    %cst_118 = arith.constant dense<0.000000e+00> : vector<16xf32>
    %370 = vector.multi_reduction <add>, %369, %cst_118 [1] : vector<16x128xf32> to vector<16xf32>
    %371 = vector.shape_cast %370 : vector<16xf32> to vector<16x1xf32>
    %cst_119 = arith.constant 1.562500e-02 : f32
    %372 = vector.broadcast %cst_119 : f32 to vector<16x1xf32>
    %373 = arith.mulf %371, %372 : vector<16x1xf32>
    %cst_120 = arith.constant 9.99999996E-13 : f32
    %374 = vector.broadcast %cst_120 : f32 to vector<16x1xf32>
    %375 = arith.addf %373, %374 : vector<16x1xf32>
    %376 = math.rsqrt %375 : vector<16x1xf32>
    %377 = vector.broadcast %376 : vector<16x1xf32> to vector<16x128xf32>
    %378 = arith.mulf %368, %377 : vector<16x128xf32>
    %c20 = arith.constant 20 : index
    %c0_121 = arith.constant 0 : index
    %379 = vector.load %arg4[%c20, %c0_121] : memref<32x128xf32, #tpu.memory_space<vmem>>, vector<1x128xf32>
    %380 = vector.broadcast %379 : vector<1x128xf32> to vector<16x128xf32>
    %381 = arith.mulf %378, %380 : vector<16x128xf32>
    %c21 = arith.constant 21 : index
    %c0_122 = arith.constant 0 : index
    %382 = vector.load %arg4[%c21, %c0_122] : memref<32x128xf32, #tpu.memory_space<vmem>>, vector<1x128xf32>
    %383 = vector.broadcast %382 : vector<1x128xf32> to vector<16x128xf32>
    %384 = arith.addf %381, %383 : vector<16x128xf32>
    %385 = vector.extract_strided_slice %384 {offsets = [0, 0], sizes = [1, 128], strides = [1, 1]} : vector<16x128xf32> to vector<1x128xf32>
    %386 = vector.extract_strided_slice %384 {offsets = [8, 0], sizes = [1, 128], strides = [1, 1]} : vector<16x128xf32> to vector<1x128xf32>
    %387 = tpu.concatenate %385, %386 in 0 : vector<1x128xf32>, vector<1x128xf32> -> vector<2x128xf32>
    %388 = arith.truncf %387 : vector<2x128xf32> to vector<2x128xbf16>
    %c0_123 = arith.constant 0 : index
    %c256 = arith.constant 256 : index
    %389 = vector.load %arg3[%c0_123, %c256] : memref<128x512xbf16, #tpu.memory_space<vmem>>, vector<128x128xbf16>
    %cst_124 = arith.constant dense<0.000000e+00> : vector<2x128xf32>
    %390 = tpu.matmul %388, %389, %cst_124 {dimension_numbers = #tpu.dot_dimension_numbers<[1], [0], [0], [1], [0, 0, 1, 1], [], []>} : vector<2x128xbf16>, vector<128x128xbf16>, vector<2x128xf32> -> vector<2x128xf32>
    %c22 = arith.constant 22 : index
    %c0_125 = arith.constant 0 : index
    %391 = vector.load %arg4[%c22, %c0_125] : memref<32x128xf32, #tpu.memory_space<vmem>>, vector<1x128xf32>
    %392 = vector.broadcast %391 : vector<1x128xf32> to vector<2x128xf32>
    %393 = arith.addf %390, %392 : vector<2x128xf32>
    %c25 = arith.constant 25 : index
    %c0_126 = arith.constant 0 : index
    %394 = vector.load %arg4[%c25, %c0_126] : memref<32x128xf32, #tpu.memory_space<vmem>>, vector<1x128xf32>
    %395 = vector.broadcast %394 : vector<1x128xf32> to vector<2x128xf32>
    %396 = arith.subf %393, %395 : vector<2x128xf32>
    %c26 = arith.constant 26 : index
    %c0_127 = arith.constant 0 : index
    %397 = vector.load %arg4[%c26, %c0_127] : memref<32x128xf32, #tpu.memory_space<vmem>>, vector<1x128xf32>
    %cst_128 = arith.constant 9.99999974E-6 : f32
    %398 = vector.broadcast %cst_128 : f32 to vector<1x128xf32>
    %399 = arith.addf %397, %398 : vector<1x128xf32>
    %400 = math.rsqrt %399 : vector<1x128xf32>
    %401 = vector.broadcast %400 : vector<1x128xf32> to vector<2x128xf32>
    %402 = arith.mulf %396, %401 : vector<2x128xf32>
    %c23 = arith.constant 23 : index
    %c0_129 = arith.constant 0 : index
    %403 = vector.load %arg4[%c23, %c0_129] : memref<32x128xf32, #tpu.memory_space<vmem>>, vector<1x128xf32>
    %404 = vector.broadcast %403 : vector<1x128xf32> to vector<2x128xf32>
    %405 = arith.mulf %402, %404 : vector<2x128xf32>
    %c24 = arith.constant 24 : index
    %c0_130 = arith.constant 0 : index
    %406 = vector.load %arg4[%c24, %c0_130] : memref<32x128xf32, #tpu.memory_space<vmem>>, vector<1x128xf32>
    %407 = vector.broadcast %406 : vector<1x128xf32> to vector<2x128xf32>
    %408 = arith.addf %405, %407 : vector<2x128xf32>
    %cst_131 = arith.constant 0.000000e+00 : f32
    %409 = vector.broadcast %cst_131 : f32 to vector<2x128xf32>
    %410 = arith.maximumf %408, %409 : vector<2x128xf32>
    %411 = arith.truncf %410 : vector<2x128xf32> to vector<2x128xbf16>
    %c0_132 = arith.constant 0 : index
    %c384_133 = arith.constant 384 : index
    %412 = vector.load %arg3[%c0_132, %c384_133] : memref<128x512xbf16, #tpu.memory_space<vmem>>, vector<128x128xbf16>
    %cst_134 = arith.constant dense<0.000000e+00> : vector<2x128xf32>
    %413 = tpu.matmul %411, %412, %cst_134 {dimension_numbers = #tpu.dot_dimension_numbers<[1], [0], [0], [1], [0, 0, 1, 1], [], []>} : vector<2x128xbf16>, vector<128x128xbf16>, vector<2x128xf32> -> vector<2x128xf32>
    %c27 = arith.constant 27 : index
    %c0_135 = arith.constant 0 : index
    %414 = vector.load %arg4[%c27, %c0_135] : memref<32x128xf32, #tpu.memory_space<vmem>>, vector<1x128xf32>
    %415 = vector.broadcast %414 : vector<1x128xf32> to vector<2x128xf32>
    %416 = arith.addf %413, %415 : vector<2x128xf32>
    %cst_136 = arith.constant dense<0xFF800000> : vector<2xf32>
    %417 = vector.multi_reduction <maximumf>, %416, %cst_136 [1] : vector<2x128xf32> to vector<2xf32>
    %418 = vector.shape_cast %417 : vector<2xf32> to vector<2x1xf32>
    %419 = vector.broadcast %418 : vector<2x1xf32> to vector<2x128xf32>
    %420 = arith.subf %416, %419 : vector<2x128xf32>
    %421 = math.exp %420 : vector<2x128xf32>
    %cst_137 = arith.constant dense<0.000000e+00> : vector<2xf32>
    %422 = vector.multi_reduction <add>, %421, %cst_137 [1] : vector<2x128xf32> to vector<2xf32>
    %423 = vector.shape_cast %422 : vector<2xf32> to vector<2x1xf32>
    %424 = vector.broadcast %423 : vector<2x1xf32> to vector<2x128xf32>
    %425 = arith.divf %421, %424 : vector<2x128xf32>
    %c0_138 = arith.constant 0 : index
    %c0_139 = arith.constant 0 : index
    %426 = vector.load %arg5[%c0_138, %c0_139] : memref<2x128xf32, #tpu.memory_space<vmem>>, vector<2x128xf32>
    tpu.vector_store %arg5[%c0_138, %c0_139], %425 {strides = array<i32>} : memref<2x128xf32, #tpu.memory_space<vmem>>, vector<2x128xf32>,
    return
  }
}

</mosaic_0001>

<bundles_post_ra>
// kernel: distilbert_classifier_gender.1
= control target key start
LH: loop header
LB: loop body
LE: loop exit
PB: predicated region body
PF: predicated region fallthrough
CT: control target
= control target key end

     0   :  { %10 = vsyncpa [#allocation3], 0  ;;  %s3767_s0 = inlined_call_operand.vmem [shape: s32[16,1], index: 0, kind: input, shape index: {}]   ;;  %s3768_s1 = inlined_call_operand.vmem [shape: f32[1,16], index: 1, kind: input, shape index: {}]   ;;  %s3769_s2 = inlined_call_operand.hbm [shape: bf16[2,128,768], index: 2, kind: input, shape index: {}]   ;;  %s3770_s3 = inlined_call_operand.hbm [shape: bf16[128,512], index: 3, kind: input, shape index: {}]   ;;  %s3771_s4 = inlined_call_operand.hbm [shape: f32[32,128], index: 4, kind: input, shape index: {}]   ;;  %s3772_s5 = inlined_call_operand.hbm [shape: f32[2,128], index: 5, kind: output, shape index: {}]  }
   0x1   :  { %11 = vsyncpa [#allocation6], 0 }
   0x2   :  { %12 = vsyncpa [#allocation4], 0  ;;  %s3409_s18 = smov [#allocation5]  }
   0x3   :  { %s34_s19 = sshll.u32 %s3409_s18, 4  ;;  %s35_s19 = int_to_ptr.vmem [resolvable:$true] %s34_s19 }
   0x4   :  { %s3331_s20 = scalar_lea.vmem %s35_s19, 4096  ;;  %p3336_p1 = scmp.lt.s32.totalorder %s35_s19, %s35_s19 }
   0x5   :  { %p3332_p0 = scmp.ne.s32.totalorder %s35_s19, %s3331_s20  ;;  %p3337_p2 = scmp.lt.s32.totalorder %s3331_s20, %s3331_s20 }
   0x7   :  { %p3338_p3 = por %p3337_p2, %p3336_p1 }
   0x9   :  { %p3339_p4 = pnand %p3338_p3, %p3332_p0 }
   0xb   :  { %3342 = shalt.err (!%p3339_p4)
}
   0xc   :  { %s3410_s21 = smov 256   ;;  %s3411_s22 = smov 16  }
   0xd   :  { %40 = dma.hbm_to_vmem [thread:$0]  %s3770_s3, 4096, %s35_s19, [#allocation6], %s3410_s21, %s3410_s21, %s3411_s22  }
   0xe   :  { %s3412_s25 = smov [#allocation2]  }
   0xf   :  { %s22_s26 = sshll.u32 %s3412_s25, 4  ;;  %s23_s26 = int_to_ptr.vmem [resolvable:$true] %s22_s26 }
  0x10   :  { %s3351_s27 = scalar_lea.vmem %s23_s26, 12288  ;;  %p3356_p6 = scmp.lt.s32.totalorder %s23_s26, %s23_s26 }
  0x11   :  { %p3352_p5 = scmp.ne.s32.totalorder %s23_s26, %s3351_s27  ;;  %p3357_p7 = scmp.lt.s32.totalorder %s3351_s27, %s3351_s27 }
  0x13   :  { %p3358_p8 = por %p3357_p7, %p3356_p6 }
  0x15   :  { %p3359_p9 = pnand %p3358_p8, %p3352_p5 }
  0x17   :  { %3362 = shalt.err (!%p3359_p9)
}
  0x18   :  { %s3413_s28 = smov 384   ;;  %s3414_s29 = smov 24  }
  0x19   :  { %28 = dma.hbm_to_vmem [thread:$0]  %s3769_s2, 12288, %s23_s26, [#allocation3], %s3413_s28, %s3413_s28, %s3414_s29  }
  0x1a   :  { %s3415_s7 = smov [#allocation7]  }
  0x1b   :  { %s46_s8 = sshll.u32 %s3415_s7, 4  ;;  %s47_s8 = int_to_ptr.vmem [resolvable:$true] %s46_s8 }
  0x1c   :  { %s3371_s3 = scalar_lea.vmem %s47_s8, 512  ;;  %p3376_p11 = scmp.lt.s32.totalorder %s47_s8, %s47_s8 }
  0x1d   :  { %p3372_p10 = scmp.ne.s32.totalorder %s47_s8, %s3371_s3  ;;  %p3377_p12 = scmp.lt.s32.totalorder %s3371_s3, %s3371_s3 }
  0x1f   :  { %p3378_p13 = por %p3377_p12, %p3376_p11 }
  0x21   :  { %p3379_p0 = pnand %p3378_p13, %p3372_p10 }
  0x23   :  { %3382 = shalt.err (!%p3379_p0)
}
  0x24   :  { %s3416_s9 = smov 128   ;;  %s3417_s10 = smov 8  }
  0x25   :  { %52 = dma.hbm_to_vmem [thread:$0]  %s3771_s4, 512, %s47_s8, [#allocation6], %s3416_s9, %s3416_s9, %s3417_s10  }
  0x26   :  { %3403 = dma.done.wait [#allocation3], 12288  }
  0x27   :  { %3404 = vsyncadd [#allocation3], 4294955008 }
  0x28   :  { %3405 = dma.done.wait [#allocation6], 4608  }
  0x29   :  { %3406 = vsyncadd [#allocation6], 4294962688  ;;  %v3418_v0 = vmov 0   ;;  %v3419_v1 = vmov 0.0   ;;  %vm3420_vm0 = vmmov 0   ;;  %v68_v2 = vld [vmem:[%s3767_s0] sm:$0xff]  ;;  %v63_v10 = vlaneseq }
  0x2a   :  { %3112 = vset.pattern.permute.xlu0 %v3418_v0  ;;  %2809 = vmatprep.subr.bf16.mxu0 %v3419_v1  ;;  %v69_v3 = vld [vmem:[%s3767_s0 + $0x8] sm:$0xff]  ;;  %v3113_v4 = vld [vmem:[#allocation5 + $0xe4] ss:$16 sps:$4 sm:$0xff]   ;;  %v3115_v6 = vld [vmem:[#allocation5 + $0xe0] ss:$16 sps:$4 sm:$0xff]  }
  0x2b   :  { %2829 = vmatprep.subr.bf16.mxu1 %v3419_v1  ;;  %2825 = vmatprep.mubr.msk.bf16.mxu0 %vm3420_vm0, %v3419_v1  ;;  %v3114_v5 = vld [vmem:[#allocation5 + $0xc4] ss:$16 sps:$4 sm:$0xff]   ;;  %v3117_v7 = vld [vmem:[#allocation5 + $0xc0] ss:$16 sps:$4 sm:$0xff]   ;;  %v3482_v13 = vand.u32 127, %v63_v10  ;;  %v3484_v14 = vshrl.u32 %v63_v10, 7 }
  0x2c   :  { %2845 = vmatprep.mubr.msk.bf16.mxu1 %vm3420_vm0, %v3419_v1  ;;  %74 = vperm.xlu0 %3112, %v68_v2   ;;  %v3116_v8 = vld [vmem:[#allocation5 + $0xa4] ss:$16 sps:$4 sm:$0xff]   ;;  %v3119_v9 = vld [vmem:[#allocation5 + $0xa0] ss:$16 sps:$4 sm:$0xff]   ;;  %v3421_v23 = vmov 1.0|1.0  }
  0x2d   :  { %2810 = vmatpush3.bf16.msra.mxu0 %v3113_v4  ;;  %2830 = vmatpush3.bf16.msra.mxu1 %v3115_v6  ;;  %v3118_v11 = vld [vmem:[#allocation5 + $0x84] ss:$16 sps:$4 sm:$0xff]   ;;  %v3121_v12 = vld [vmem:[#allocation5 + $0x80] ss:$16 sps:$4 sm:$0xff]   ;;  %vm92_vm1 = vcmp.eq.s32.totalorder %v3482_v13, %v3484_v14  ;;  %vm65_vm6 = vcmp.lt.s32.totalorder %v3482_v13, 64  ;;  %vm387_vm7 = vcmp.lt.s32.totalorder %v3482_v13, 32 }
  0x2e   :  { %2811 = vmatprep.subr.bf16.mxu0 %v3419_v1  ;;  %2831 = vmatprep.subr.bf16.mxu1 %v3419_v1  ;;  %v3120_v15 = vld [vmem:[#allocation5 + $0x64] ss:$16 sps:$4 sm:$0xff]   ;;  %v3123_v16 = vld [vmem:[#allocation5 + $0x60] ss:$16 sps:$4 sm:$0xff]   ;;  %vm2528_vm2 = vmpackc.low %vm92_vm1, %vm92_vm1  ;;  %v3507_v41 = vsel %vm65_vm6, 1.0, %v3419_v1  ;;  %vm391_vm8 = vcmp.ge.s32.totalorder %v3482_v13, 32 }
  0x2f   :  { %v3122_v17 = vld [vmem:[#allocation5 + $0x44] ss:$16 sps:$4 sm:$0xff]   ;;  %v3125_v18 = vld [vmem:[#allocation5 + $0x40] ss:$16 sps:$4 sm:$0xff]   ;;  %vm392_vm9 = vmand %vm391_vm8, %vm65_vm6  ;;  %vm364_vm11 = vcmp.lt.s32.totalorder %v3482_v13, 8  ;;  %vm367_vm13 = vcmp.ge.s32.totalorder %v3482_v13, 8 }
  0x30   :  { %77 = vperm.xlu0 %3112, %v69_v3   ;;  %v3124_v19 = vld [vmem:[#allocation5 + $0x24] ss:$16 sps:$4 sm:$0xff]   ;;  %v3127_v20 = vld [vmem:[#allocation5 + $0x20] ss:$16 sps:$4 sm:$0xff]   ;;  %vm370_vm14 = vcmp.lt.s32.totalorder %v3482_v13, 16 }
  0x31   :  { %2812 = vmatpush3.bf16.msra.mxu0 %v3114_v5  ;;  %2832 = vmatpush3.bf16.msra.mxu1 %v3117_v7  ;;  %v3126_v21 = vld [vmem:[#allocation5 + $0x4] ss:$16 sps:$4 sm:$0xff]   ;;  %v3128_v22 = vld [vmem:[#allocation5] ss:$16 sps:$4 sm:$0xff]   ;;  %vm372_vm1 = vmand %vm367_vm13, %vm370_vm14 }
  0x32   :  { %2813 = vmatprep.subr.bf16.mxu0 %v3419_v1  ;;  %2833 = vmatprep.subr.bf16.mxu1 %v3419_v1  ;;  %v3129_v36 = vld [vmem:[#allocation2 + $0x150] ss:$24 sps:$4 sm:$0xff]   ;;  %v3131_v37 = vld [vmem:[#allocation2 + $0x154] ss:$24 sps:$4 sm:$0xff]   ;;  %v3135_v50 = vld [vmem:[#allocation2 + $0x124] ss:$24 sps:$4 sm:$0xff]  }
  0x33   :  { %v3132_v38 = vld [vmem:[#allocation2 + $0x158] ss:$24 sps:$4 sm:$0xff]   ;;  %v3136_v52 = vld [vmem:[#allocation2 + $0x128] ss:$24 sps:$4 sm:$0xff]   ;;  %v3139_v53 = vld [vmem:[#allocation2 + $0xf4] ss:$24 sps:$4 sm:$0xff]  }
  0x34   :  { %v3133_v51 = vld [vmem:[#allocation2 + $0x120] ss:$24 sps:$4 sm:$0xff]   ;;  %v3137_v54 = vld [vmem:[#allocation2 + $0xf0] ss:$24 sps:$4 sm:$0xff]   ;;  %v3143_v57 = vld [vmem:[#allocation2 + $0xc4] ss:$24 sps:$4 sm:$0xff]  }
  0x35   :  { %2814 = vmatpush3.bf16.msra.mxu0 %v3116_v8  ;;  %2834 = vmatpush3.bf16.msra.mxu1 %v3119_v9  ;;  %v3140_v55 = vld [vmem:[#allocation2 + $0xf8] ss:$24 sps:$4 sm:$0xff]   ;;  %v3144_v58 = vld [vmem:[#allocation2 + $0xc8] ss:$24 sps:$4 sm:$0xff]   ;;  %v3147_v59 = vld [vmem:[#allocation2 + $0x94] ss:$24 sps:$4 sm:$0xff]  }
  0x36   :  { %2815 = vmatprep.subr.bf16.mxu0 %v3419_v1  ;;  %2835 = vmatprep.subr.bf16.mxu1 %v3419_v1  ;;  %v3141_v56 = vld [vmem:[#allocation2 + $0xc0] ss:$24 sps:$4 sm:$0xff]   ;;  %v3145_v60 = vld [vmem:[#allocation2 + $0x90] ss:$24 sps:$4 sm:$0xff]   ;;  %v3151_v62 = vld [vmem:[#allocation2 + $0x64] ss:$24 sps:$4 sm:$0xff]  }
  0x37   :  { %v3148_v61 = vld [vmem:[#allocation2 + $0x98] ss:$24 sps:$4 sm:$0xff]   ;;  %v3152_v2 = vld [vmem:[#allocation2 + $0x68] ss:$24 sps:$4 sm:$0xff]   ;;  %v3155_v3 = vld [vmem:[#allocation2 + $0x34] ss:$24 sps:$4 sm:$0xff]  }
  0x38   :  { %v3149_v63 = vld [vmem:[#allocation2 + $0x60] ss:$24 sps:$4 sm:$0xff]   ;;  %v3153_v4 = vld [vmem:[#allocation2 + $0x30] ss:$24 sps:$4 sm:$0xff]   ;;  %v3159_v6 = vld [vmem:[#allocation2 + $0x4] ss:$24 sps:$4 sm:$0xff]  }
  0x39   :  { %2816 = vmatpush3.bf16.msra.mxu0 %v3118_v11  ;;  %2836 = vmatpush3.bf16.msra.mxu1 %v3121_v12  ;;  %v3156_v5 = vld [vmem:[#allocation2 + $0x38] ss:$24 sps:$4 sm:$0xff]   ;;  %v3160_v8 = vld [vmem:[#allocation2 + $0x8] ss:$24 sps:$4 sm:$0xff]  }
  0x3a   :  { %2817 = vmatprep.subr.bf16.mxu0 %v3419_v1  ;;  %2837 = vmatprep.subr.bf16.mxu1 %v3419_v1  ;;  %v3157_v7 = vld [vmem:[#allocation2] ss:$24 sps:$4 sm:$0xff]  }
  0x3d   :  { %2818 = vmatpush3.bf16.msra.mxu0 %v3120_v15  ;;  %2838 = vmatpush3.bf16.msra.mxu1 %v3123_v16 }
  0x3e   :  { %2819 = vmatprep.subr.bf16.mxu0 %v3419_v1  ;;  %2839 = vmatprep.subr.bf16.mxu1 %v3419_v1 }
  0x41   :  { %2820 = vmatpush3.bf16.msra.mxu0 %v3122_v17  ;;  %2840 = vmatpush3.bf16.msra.mxu1 %v3125_v18 }
  0x42   :  { %2821 = vmatprep.subr.bf16.mxu0 %v3419_v1  ;;  %2841 = vmatprep.subr.bf16.mxu1 %v3419_v1 }
  0x45   :  { %2822 = vmatpush3.bf16.msra.mxu0 %v3124_v19  ;;  %2842 = vmatpush3.bf16.msra.mxu1 %v3127_v20  ;;  %v2540_v19 = vld [vmem:[#allocation7] ss:$0 sm:$0xff] }
  0x46   :  { %2823 = vmatprep.subr.bf16.mxu0 %v3419_v1  ;;  %2843 = vmatprep.subr.bf16.mxu1 %v3419_v1 }
  0x49   :  { %2824 = vmatpush3.bf16.msra.mxu0 %v3126_v21  ;;  %2844 = vmatpush3.bf16.msra.mxu1 %v3128_v22 }
  0x4a   :  { %2849 = vmatprep.subr.bf16.mxu1 %v3419_v1  ;;  %556 = vmatprep.subr.bf16.mxu0 %v3131_v37  ;;  %v2569_v37 = vld [vmem:[#allocation7 + $0x3] ss:$0 sm:$0xff] }
  0x4c   :  { %2826 = vmatmul.mubr.msk.bf16.vlgmr.msra.gmra.mxu0 %vm2528_vm2, %v3421_v23 }
  0x4d   :  { %588 = vmatprep.mubr.bf16.mxu0 %v3418_v0  ;;  %557 = vmatpush1.bf16.msra.mxu0 %v3129_v36 }
  0x4e   :  { %558 = vmatprep.subr.bf16.mxu0 %v3135_v50 }
  0x51   :  { %559 = vmatpush1.bf16.msra.mxu0 %v3133_v51 }
  0x52   :  { %560 = vmatprep.subr.bf16.mxu0 %v3139_v53 }
  0x55   :  { %561 = vmatpush1.bf16.msra.mxu0 %v3137_v54  ;;  %v3558_v54 = vsel %vm392_vm9, 1.0, %v3419_v1 }
  0x56   :  { %562 = vmatprep.subr.bf16.mxu0 %v3143_v57 }
  0x59   :  { %563 = vmatpush1.bf16.msra.mxu0 %v3141_v56 }
  0x5a   :  { %564 = vmatprep.subr.bf16.mxu0 %v3147_v59 }
  0x5d   :  { %565 = vmatpush1.bf16.msra.mxu0 %v3145_v60 }
  0x5e   :  { %566 = vmatprep.subr.bf16.mxu0 %v3151_v62  ;;  %v380_v62 = vsub.s32 0, %v3484_v14 }
  0x61   :  { %567 = vmatpush1.bf16.msra.mxu0 %v3149_v63 }
  0x62   :  { %568 = vmatprep.subr.bf16.mxu0 %v3155_v3 }
  0x65   :  { %569 = vmatpush1.bf16.msra.mxu0 %v3153_v4 }
  0x66   :  { %570 = vmatprep.subr.bf16.mxu0 %v3159_v6 }
  0x69   :  { %571 = vmatpush1.bf16.msra.mxu0 %v3157_v7  ;;  %v3422_v7 = vmov -1e+09  }
  0x6a   :  { %2893 = vmatprep.subr.bf16.mxu0 %v3419_v1 }
  0xa7   :  { %v75_v24 = vpop.permute.xlu0 %74 }
  0xa8   :  { %vm79_vm3 = vcmp.eq.s32.totalorder %v3482_v13, %v75_v24 }
  0xab   :  { %v78_v25 = vpop.permute.xlu0 %77 }
  0xac   :  { %vm80_vm4 = vcmp.eq.s32.totalorder %v3482_v13, %v78_v25 }
  0xad   :  { %vm2538_vm5 = vmpackc.low %vm80_vm4, %vm79_vm3  ;;  %vm706_vm3 = vcmask 130048   ;;  %vm2485_vm4 = vcmask 1041408  }
  0xae   :  { %2846 = vmatmul.mubr.msk.bf16.vlgmr.msra.gmra.mxu1 %vm2538_vm5, %v3421_v23  ;;  %v2541_v23 = vld [vmem:[#allocation7 + $0x1] ss:$0 sm:$0xff] }
  0xaf   :  { %2865 = vmatprep.mubr.msk.bf16.mxu1 %vm3420_vm0, %v3419_v1  ;;  %2850 = vmatpush3.bf16.msra.mxu1 %v3132_v38 }
  0xb0   :  { %2851 = vmatprep.subr.bf16.mxu1 %v3419_v1 }
  0xb3   :  { %2852 = vmatpush3.bf16.msra.mxu1 %v3136_v52 }
  0xb4   :  { %2853 = vmatprep.subr.bf16.mxu1 %v3419_v1 }
  0xb7   :  { %2854 = vmatpush3.bf16.msra.mxu1 %v3140_v55 }
  0xb8   :  { %2855 = vmatprep.subr.bf16.mxu1 %v3419_v1 }
  0xbb   :  { %2856 = vmatpush3.bf16.msra.mxu1 %v3144_v58 }
  0xbc   :  { %2857 = vmatprep.subr.bf16.mxu1 %v3419_v1 }
  0xbf   :  { %2858 = vmatpush3.bf16.msra.mxu1 %v3148_v61  ;;  %v375_v61 = vld [vmem:[%s3768_s1] sm:$0x1]  ;;  %s3423_s1 = smov [#allocation8]  }
  0xc0   :  { %2859 = vmatprep.subr.bf16.mxu1 %v3419_v1  ;;  %vm376_vm10 = vcmp.gt.f32.partialorder %v375_v61, 0.0  ;;  %s2504_s16 = sshll.u32 %s3423_s1, 4  ;;  %s2505_s16 = int_to_ptr.vmem [resolvable:$true] %s2504_s16 }
  0xc1   :  { %v377_v63 = vsel %vm376_vm10, 1, %v3418_v0  ;;  %s3383_s17 = scalar_lea.vmem %s2505_s16, 32  ;;  %p3388_p2 = scmp.lt.s32.totalorder %s2505_s16, %s2505_s16 }
  0xc2   :  { %p3384_p1 = scmp.ne.s32.totalorder %s2505_s16, %s3383_s17  ;;  %p3389_p3 = scmp.lt.s32.totalorder %s3383_s17, %s3383_s17 }
  0xc3   :  { %2860 = vmatpush3.bf16.msra.mxu1 %v3152_v2  ;;  %v381_v2 = vrot.slane %v377_v63, %v380_v62 }
  0xc4   :  { %2861 = vmatprep.subr.bf16.mxu1 %v3419_v1  ;;  %p3390_p4 = por %p3389_p3, %p3388_p2 }
  0xc5   :  { %vm382_vm12 = vcmp.eq.s32.totalorder %v381_v2, 1 }
  0xc6   :  { %vm383_vm15 = vmand %vm364_vm11, %vm382_vm12  ;;  %p3391_p5 = pnand %p3390_p4, %p3384_p1 }
  0xc7   :  { %2862 = vmatpush3.bf16.msra.mxu1 %v3156_v5  ;;  %vm384_vm2 = vmand %vm372_vm1, %vm382_vm12 }
  0xc8   :  { %2863 = vmatprep.subr.bf16.mxu1 %v3419_v1 }
  0xcb   :  { %2864 = vmatpush3.bf16.msra.mxu1 %v3160_v8  ;;  %v3580_v8 = vsel %vm383_vm15, 0.0, %v3422_v7 }
  0xcc   :  { %2869 = vmatprep.subr.bf16.mxu1 %v3419_v1 }
 0x10c   :  { %v227_v26 = vpop.f32.mrf.mxu0 }
 0x10e   :  { %v2827_v27 = vpop.f32.mrf.mxu0 }
 0x110   :  { %v230_v28 = vpop.f32.mrf.mxu0 }
 0x112   :  { %v2828_v29 = vpop.f32.mrf.mxu0 }
 0x16e   :  { %v316_v30 = vpop.f32.mrf.mxu1 }
 0x16f   :  { %v317_v31 = vadd.f32 %v316_v30, %v227_v26  ;;  %v2570_v30 = vld [vmem:[#allocation7 + $0x4] ss:$0 sm:$0xff] }
 0x170   :  { %v2847_v32 = vpop.f32.mrf.mxu1 }
 0x171   :  { %323 = vadd.xlane.f32.xlu1 %v317_v31 }
 0x172   :  { %v319_v33 = vpop.f32.mrf.mxu1 }
 0x173   :  { %v320_v34 = vadd.f32 %v319_v33, %v230_v28 }
 0x174   :  { %v2848_v35 = vpop.f32.mrf.mxu1 }
 0x175   :  { %325 = vadd.xlane.f32.xlu1 %v320_v34 }
 0x1fa   :  { %v324_v39 = vpop.xlane.xlu1 %323 }
 0x1fb   :  { %v327_v40 = vmul.f32 0.015625, %v324_v39 }
 0x1fd   :  { %v329_v42 = vsub.f32 %v317_v31, %v327_v40 }
 0x1fe   :  { %v326_v43 = vpop.xlane.xlu1 %325 }
 0x1ff   :  { %v328_v44 = vmul.f32 0.015625, %v326_v43  ;;  %v3510_v45 = vmul.f32 %v3507_v41, %v329_v42 }
 0x201   :  { %v330_v46 = vsub.f32 %v320_v34, %v328_v44  ;;  %v333_v47 = vmul.f32 %v3510_v45, %v3510_v45  ;;  %v3541_v34 = vsel %vm387_vm7, 1.0, %v3419_v1  ;;  %v2568_v44 = vld [vmem:[#allocation7 + $0x2] ss:$0 sm:$0xff] }
 0x203   :  { %335 = vadd.xlane.f32.xlu0 %v333_v47  ;;  %v3515_v48 = vmul.f32 %v3507_v41, %v330_v46 }
 0x205   :  { %v334_v49 = vmul.f32 %v3515_v48, %v3515_v48 }
 0x207   :  { %337 = vadd.xlane.f32.xlu1 %v334_v49 }
 0x28c   :  { %v336_v9 = vpop.xlane.xlu0 %335 }
 0x28d   :  { %v339_v10 = vmul.f32 0.015625, %v336_v9 }
 0x28f   :  { %v341_v11 = vadd.f32 1e-12, %v339_v10 }
 0x290   :  { %v338_v12 = vpop.xlane.xlu1 %337 }
 0x291   :  { %3257 = vrsqrt.f32 %v341_v11  ;;  %v340_v15 = vmul.f32 0.015625, %v338_v12 }
 0x293   :  { %v342_v16 = vadd.f32 1e-12, %v340_v15  ;;  %v3584_v15 = vsel %vm384_vm2, 0.0, %v3422_v7 }
 0x295   :  { %3259 = vrsqrt.f32 %v342_v16 }
 0x29e   :  { %v3258_v17 = vpop.eup %3257 }
 0x29f   :  { %v345_v18 = vmul.f32 %v3258_v17, %v3510_v45 }
 0x2a1   :  { %v352_v22 = vmul.f32 %v2540_v19, %v345_v18 }
 0x2a2   :  { %v3260_v20 = vpop.eup %3259 }
 0x2a3   :  { %v346_v21 = vmul.f32 %v3260_v20, %v3515_v48  ;;  %v3529_v25 = vadd.f32 %v2541_v23, %v352_v22 }
 0x2a5   :  { %v353_v24 = vmul.f32 %v2540_v19, %v346_v21 }
 0x2a7   :  { %v3531_v26 = vadd.f32 %v2541_v23, %v353_v24 }
 0x2a9   :  { %v395_v27 = vpack.c.bf16 %v3531_v26, %v3529_v25 }
 0x2ab   :  { %589 = vmatmul.mubr.bf16.vlgmr.msra.gmra.mxu0 %v395_v27  ;;  %2866 = vmatmul.mubr.bf16.vlgmr.msra.gmra.mxu1 %v395_v27 }
 0x2ac   :  { %2871 = vmatprep.mubr.msk.bf16.mxu1 %vm3420_vm0, %v3419_v1  ;;  %2909 = vmatprep.mubr.msk.bf16.mxu0 %vm3420_vm0, %v3419_v1 }
 0x36b   :  { %v590_v28 = vpop.f32.mrf.mxu0  ;;  %v633_v29 = vpop.f32.mrf.mxu1 }
 0x36c   :  { %v660_v33 = vadd.f32 %v2570_v30, %v633_v29  ;;  %v645_v50 = vadd.f32 %v2568_v44, %v590_v28 }
 0x36d   :  { %v592_v31 = vpop.f32.mrf.mxu0  ;;  %v2867_v32 = vpop.f32.mrf.mxu1 }
 0x36e   :  { %v3544_v42 = vmul.f32 %v3541_v34, %v660_v33  ;;  %v652_v45 = vadd.f32 %v2569_v37, %v592_v31  ;;  %v662_v52 = vmul.f32 %v3541_v34, %v645_v50  ;;  %v733_v57 = vmul.f32 %v3558_v54, %v645_v50  ;;  %v3161_v50 = vld [vmem:[#allocation2 + $0x15c] ss:$24 sps:$4 sm:$0xff]  }
 0x36f   :  { %v594_v35 = vpop.f32.mrf.mxu0  ;;  %v636_v36 = vpop.f32.mrf.mxu1  ;;  %v800_v58 = vmul.f32 %v3558_v54, %v660_v33  ;;  %2894 = vmatpush3.bf16.msra.mxu0 %v3161_v50  ;;  %v3172_v50 = vld [vmem:[#allocation2 + $0xd0] ss:$24 sps:$4 sm:$0xff]  }
 0x370   :  { %v661_v38 = vadd.f32 %v2570_v30, %v636_v36  ;;  %v646_v47 = vadd.f32 %v2568_v44, %v594_v35  ;;  %2895 = vmatprep.subr.bf16.mxu0 %v3419_v1 }
 0x371   :  { %v596_v39 = vpop.f32.mrf.mxu0  ;;  %v2868_v40 = vpop.f32.mrf.mxu1 }
 0x372   :  { %v3547_v43 = vmul.f32 %v3541_v34, %v661_v38  ;;  %v653_v46 = vadd.f32 %v2569_v37, %v596_v39  ;;  %v663_v51 = vmul.f32 %v3541_v34, %v646_v47  ;;  %v734_v55 = vmul.f32 %v3558_v54, %v646_v47 }
 0x373   :  { %v801_v56 = vmul.f32 %v3558_v54, %v661_v38 }
 0x374   :  { %v732_v48 = vpack.c.bf16 %v3547_v43, %v3544_v42  ;;  %v654_v49 = vpack.c.bf16 %v653_v46, %v652_v45  ;;  %v664_v53 = vpack.c.bf16 %v663_v51, %v662_v52  ;;  %v735_v59 = vpack.c.bf16 %v734_v55, %v733_v57  ;;  %v3162_v51 = vld [vmem:[#allocation2 + $0x12c] ss:$24 sps:$4 sm:$0xff]   ;;  %v3163_v52 = vld [vmem:[#allocation2 + $0xfc] ss:$24 sps:$4 sm:$0xff]  }
 0x375   :  { %v802_v60 = vpack.c.bf16 %v801_v56, %v800_v58  ;;  %2896 = vmatpush3.bf16.msra.mxu0 %v3162_v51  ;;  %v3166_v42 = vld [vmem:[#allocation2 + $0x6c] ss:$24 sps:$4 sm:$0xff]   ;;  %v3167_v43 = vld [vmem:[#allocation2 + $0x3c] ss:$24 sps:$4 sm:$0xff]   ;;  %v3173_v51 = vld [vmem:[#allocation2 + $0xa0] ss:$24 sps:$4 sm:$0xff]  }
 0x376   :  { %2870 = vmatpush3.bf16.xpose.msra.mxu1 %v654_v49  ;;  %2897 = vmatprep.subr.bf16.mxu0 %v3419_v1 }
 0x377   :  { %2875 = vmatprep.subr.bf16.mxu1 %v3419_v1 }
 0x379   :  { %2898 = vmatpush3.bf16.msra.mxu0 %v3163_v52  ;;  %v3174_v52 = vld [vmem:[#allocation2 + $0x70] ss:$24 sps:$4 sm:$0xff]  }
 0x37a   :  { %2899 = vmatprep.subr.bf16.mxu0 %v3419_v1 }
 0x37d   :  { %2872 = vmatmul.mubr.bf16.vlgmr.msra.gmra.mxu1 %v664_v53  ;;  %v3164_v53 = vld [vmem:[#allocation2 + $0xcc] ss:$24 sps:$4 sm:$0xff]  }
 0x37e   :  { %2876 = vmatpush3.bf16.xpose.msra.mxu1 %v654_v49  ;;  %2877 = vmatprep.mubr.msk.bf16.mxu1 %vm3420_vm0, %v3419_v1 }
 0x37f   :  { %2881 = vmatprep.subr.bf16.mxu1 %v3419_v1  ;;  %2900 = vmatpush3.bf16.msra.mxu0 %v3164_v53  ;;  %v3175_v53 = vld [vmem:[#allocation2 + $0x40] ss:$24 sps:$4 sm:$0xff]  }
 0x380   :  { %2901 = vmatprep.subr.bf16.mxu0 %v3419_v1 }
 0x385   :  { %2878 = vmatmul.mubr.bf16.vlgmr.msra.gmra.mxu1 %v735_v59 }
 0x386   :  { %2882 = vmatpush3.bf16.msra.mxu1 %v802_v60  ;;  %2883 = vmatprep.mubr.msk.bf16.mxu1 %vm3420_vm0, %v3419_v1 }
 0x387   :  { %2887 = vmatprep.subr.bf16.mxu1 %v3419_v1 }
 0x43d   :  { %v699_v3 = vpop.f32.mrf.mxu1 }
 0x43e   :  { %v700_v18 = vadd.f32 %v699_v3, %v3580_v8 }
 0x43f   :  { %v2873_v4 = vpop.f32.mrf.mxu1 }
 0x440   :  { %v707_v21 = vsel %vm706_vm3, %v700_v18, -inf }
 0x441   :  { %v702_v5 = vpop.f32.mrf.mxu1 }
 0x442   :  { %v703_v20 = vadd.f32 %v702_v5, %v3584_v15 }
 0x443   :  { %v2874_v6 = vpop.f32.mrf.mxu1 }
 0x444   :  { %v710_v22 = vsel %vm706_vm3, %v703_v20, -inf }
 0x445   :  { %v770_v9 = vpop.f32.mrf.mxu1 }
 0x446   :  { %v771_v10 = vadd.f32 %v770_v9, %v3580_v8  ;;  %v3165_v9 = vld [vmem:[#allocation2 + $0x9c] ss:$24 sps:$4 sm:$0xff]  }
 0x447   :  { %v2879_v11 = vpop.f32.mrf.mxu1  ;;  %2902 = vmatpush3.bf16.msra.mxu0 %v3165_v9  ;;  %v2583_v9 = vld [vmem:[#allocation7 + $0x7] ss:$0 sm:$0xff] }
 0x448   :  { %v777_v12 = vsel %vm706_vm3, %v771_v10, -inf  ;;  %2903 = vmatprep.subr.bf16.mxu0 %v3419_v1 }
 0x449   :  { %778 = vmax.xlane.f32.xlu1 %v777_v12  ;;  %v773_v16 = vpop.f32.mrf.mxu1 }
 0x44a   :  { %v774_v13 = vadd.f32 %v773_v16, %v3584_v15 }
 0x44b   :  { %v2880_v17 = vpop.f32.mrf.mxu1  ;;  %2904 = vmatpush3.bf16.msra.mxu0 %v3166_v42 }
 0x44c   :  { %v780_v19 = vsel %vm706_vm3, %v774_v13, -inf  ;;  %2905 = vmatprep.subr.bf16.mxu0 %v3419_v1 }
 0x44d   :  { %781 = vmax.xlane.f32.xlu1 %v780_v19 }
 0x44f   :  { %2906 = vmatpush3.bf16.msra.mxu0 %v3167_v43 }
 0x450   :  { %2907 = vmatprep.subr.bf16.mxu0 %v3419_v1 }
 0x451   :  { %708 = vmax.xlane.f32.xlu1 %v707_v21 }
 0x455   :  { %711 = vmax.xlane.f32.xlu1 %v710_v22 }
 0x4d2   :  { %v779_v23 = vpop.xlane.xlu1 %778 }
 0x4d3   :  { %v783_v24 = vsub.f32 %v771_v10, %v779_v23  ;;  %v2573_v23 = vld [vmem:[#allocation7 + $0x5] ss:$0 sm:$0xff] }
 0x4d5   :  { %v785_v27 = vmul.f32 1.442695, %v783_v24 }
 0x4d6   :  { %v782_v28 = vpop.xlane.xlu1 %781 }
 0x4d7   :  { %3261 = vpow2.f32 %v785_v27  ;;  %v784_v29 = vsub.f32 %v774_v13, %v782_v28 }
 0x4d9   :  { %v787_v30 = vmul.f32 1.442695, %v784_v29 }
 0x4da   :  { %v709_v31 = vpop.xlane.xlu1 %708 }
 0x4db   :  { %3263 = vpow2.f32 %v787_v30  ;;  %v713_v32 = vsub.f32 %v700_v18, %v709_v31 }
 0x4dd   :  { %v715_v33 = vmul.f32 1.442695, %v713_v32 }
 0x4de   :  { %v712_v35 = vpop.xlane.xlu1 %711 }
 0x4df   :  { %3265 = vpow2.f32 %v715_v33  ;;  %v714_v36 = vsub.f32 %v703_v20, %v712_v35  ;;  %v3169_v35 = vld [vmem:[#allocation2 + $0x160] ss:$24 sps:$4 sm:$0xff]  }
 0x4e1   :  { %v717_v37 = vmul.f32 1.442695, %v714_v36 }
 0x4e3   :  { %3267 = vpow2.f32 %v717_v37 }
 0x4e4   :  { %v3262_v38 = vpop.eup %3261 }
 0x4e5   :  { %v789_v39 = vsel %vm706_vm3, %v3262_v38, 0.0 }
 0x4e6   :  { %790 = vadd.xlane.f32.xlu1 %v789_v39 }
 0x4e8   :  { %v3264_v40 = vpop.eup %3263 }
 0x4e9   :  { %v792_v44 = vsel %vm706_vm3, %v3264_v40, 0.0 }
 0x4ea   :  { %793 = vadd.xlane.f32.xlu1 %v792_v44 }
 0x4ec   :  { %v3266_v45 = vpop.eup %3265 }
 0x4ed   :  { %v719_v46 = vsel %vm706_vm3, %v3266_v45, 0.0 }
 0x4ee   :  { %720 = vadd.xlane.f32.xlu1 %v719_v46 }
 0x4f0   :  { %v3268_v47 = vpop.eup %3267 }
 0x4f1   :  { %v722_v49 = vsel %vm706_vm3, %v3268_v47, 0.0 }
 0x4f2   :  { %723 = vadd.xlane.f32.xlu0 %v722_v49  ;;  %v3171_v49 = vld [vmem:[#allocation2 + $0x100] ss:$24 sps:$4 sm:$0xff]  }
 0x56f   :  { %v791_v55 = vpop.xlane.xlu1 %790 }
 0x570   :  { %3269 = vrcp.f32 %v791_v55  ;;  %v3176_v55 = vld [vmem:[#allocation2 + $0x10] ss:$24 sps:$4 sm:$0xff]  }
 0x573   :  { %v794_v56 = vpop.xlane.xlu1 %793 }
 0x574   :  { %3271 = vrcp.f32 %v794_v56  ;;  %v3177_v56 = vld [vmem:[#allocation2 + $0x164] ss:$24 sps:$4 sm:$0xff]  }
 0x577   :  { %v721_v57 = vpop.xlane.xlu1 %720 }
 0x578   :  { %3273 = vrcp.f32 %v721_v57 }
 0x57b   :  { %v724_v58 = vpop.xlane.xlu0 %723 }
 0x57c   :  { %3275 = vrcp.f32 %v724_v58 }
 0x57d   :  { %v3270_v59 = vpop.eup %3269 }
 0x57e   :  { %v797_v61 = vmul.f32 %v3270_v59, %v3262_v38 }
 0x581   :  { %v3272_v60 = vpop.eup %3271 }
 0x582   :  { %v798_v63 = vmul.f32 %v3272_v60, %v3264_v40 }
 0x584   :  { %v799_v2 = vpack.c.bf16 %v798_v63, %v797_v61 }
 0x585   :  { %v3274_v3 = vpop.eup %3273 }
 0x586   :  { %2884 = vmatmul.mubr.msk.bf16.vlgmr.msra.gmra.mxu1 %vm706_vm3, %v799_v2  ;;  %v727_v5 = vmul.f32 %v3274_v3, %v3266_v45 }
 0x587   :  { %2888 = vmatpush3.bf16.msra.mxu1 %v732_v48  ;;  %2889 = vmatprep.mubr.msk.bf16.mxu1 %vm3420_vm0, %v3419_v1  ;;  %v3168_v48 = vld [vmem:[#allocation2 + $0xc] ss:$24 sps:$4 sm:$0xff]  }
 0x588   :  { %2913 = vmatprep.subr.bf16.mxu1 %v3419_v1  ;;  %2908 = vmatpush3.bf16.msra.mxu0 %v3168_v48 }
 0x589   :  { %v3276_v4 = vpop.eup %3275  ;;  %2933 = vmatprep.subr.bf16.mxu0 %v3419_v1 }
 0x58a   :  { %v728_v6 = vmul.f32 %v3276_v4, %v3268_v47  ;;  %v2582_v4 = vld [vmem:[#allocation7 + $0x6] ss:$0 sm:$0xff] }
 0x58c   :  { %v729_v7 = vpack.c.bf16 %v728_v6, %v727_v5 }
 0x58e   :  { %2890 = vmatmul.mubr.msk.bf16.vlgmr.msra.gmra.mxu1 %vm706_vm3, %v729_v7 }
 0x58f   :  { %2929 = vmatprep.mubr.msk.bf16.mxu1 %vm3420_vm0, %v3419_v1  ;;  %2914 = vmatpush3.bf16.msra.mxu1 %v3169_v35 }
 0x590   :  { %2915 = vmatprep.subr.bf16.mxu1 %v3419_v1 }
 0x646   :  { %v840_v10 = vpop.f32.mrf.mxu1 }
 0x648   :  { %v2885_v11 = vpop.f32.mrf.mxu1 }
 0x649   :  { %v3178_v11 = vld [vmem:[#allocation2 + $0x134] ss:$24 sps:$4 sm:$0xff]  }
 0x64a   :  { %v843_v12 = vpop.f32.mrf.mxu1 }
 0x64c   :  { %v2886_v16 = vpop.f32.mrf.mxu1 }
 0x64d   :  { %v3180_v16 = vld [vmem:[#allocation2 + $0xd4] ss:$24 sps:$4 sm:$0xff]  }
 0x64e   :  { %v884_v13 = vpop.f32.mrf.mxu1 }
 0x64f   :  { %v885_v19 = vadd.f32 %v884_v13, %v840_v10  ;;  %v3181_v13 = vld [vmem:[#allocation2 + $0xa4] ss:$24 sps:$4 sm:$0xff]  }
 0x650   :  { %v2891_v17 = vpop.f32.mrf.mxu1 }
 0x651   :  { %v3182_v17 = vld [vmem:[#allocation2 + $0x74] ss:$24 sps:$4 sm:$0xff]  }
 0x652   :  { %v887_v18 = vpop.f32.mrf.mxu1 }
 0x653   :  { %v888_v20 = vadd.f32 %v887_v18, %v843_v12  ;;  %v3179_v12 = vld [vmem:[#allocation2 + $0x104] ss:$24 sps:$4 sm:$0xff]   ;;  %v3184_v18 = vld [vmem:[#allocation2 + $0x14] ss:$24 sps:$4 sm:$0xff]  }
 0x654   :  { %v2892_v21 = vpop.f32.mrf.mxu1 }
 0x655   :  { %v891_v22 = vpack.c.bf16 %v888_v20, %v885_v19  ;;  %v2584_v19 = vld [vmem:[#allocation7 + $0x8] ss:$0 sm:$0xff] }
 0x657   :  { %2910 = vmatmul.mubr.bf16.vlgmr.msra.gmra.mxu0 %v891_v22 }
 0x658   :  { %2949 = vmatprep.mubr.msk.bf16.mxu0 %vm3420_vm0, %v3419_v1  ;;  %2934 = vmatpush3.bf16.msra.mxu0 %v3177_v56 }
 0x659   :  { %2935 = vmatprep.subr.bf16.mxu0 %v3419_v1 }
 0x65c   :  { %2936 = vmatpush3.bf16.msra.mxu0 %v3178_v11  ;;  %v3203_v11 = vld [vmem:[#allocation2 + $0x214] ss:$24 sps:$4 sm:$0xff]  }
 0x65d   :  { %2937 = vmatprep.subr.bf16.mxu0 %v3419_v1 }
 0x660   :  { %2938 = vmatpush3.bf16.msra.mxu0 %v3179_v12  ;;  %v3201_v12 = vld [vmem:[#allocation2 + $0x210] ss:$24 sps:$4 sm:$0xff]  }
 0x661   :  { %2939 = vmatprep.subr.bf16.mxu0 %v3419_v1 }
 0x664   :  { %2940 = vmatpush3.bf16.msra.mxu0 %v3180_v16  ;;  %v3204_v16 = vld [vmem:[#allocation2 + $0x218] ss:$24 sps:$4 sm:$0xff]  }
 0x665   :  { %2941 = vmatprep.subr.bf16.mxu0 %v3419_v1 }
 0x668   :  { %2942 = vmatpush3.bf16.msra.mxu0 %v3181_v13  ;;  %v3207_v13 = vld [vmem:[#allocation2 + $0x1e4] ss:$24 sps:$4 sm:$0xff]  }
 0x669   :  { %2943 = vmatprep.subr.bf16.mxu0 %v3419_v1 }
 0x66c   :  { %2944 = vmatpush3.bf16.msra.mxu0 %v3182_v17  ;;  %v3205_v17 = vld [vmem:[#allocation2 + $0x1e0] ss:$24 sps:$4 sm:$0xff]  }
 0x66d   :  { %2945 = vmatprep.subr.bf16.mxu0 %v3419_v1 }
 0x717   :  { %v995_v24 = vpop.f32.mrf.mxu0 }
 0x718   :  { %v996_v27 = vadd.f32 %v2573_v23, %v995_v24 }
 0x719   :  { %v2911_v28 = vpop.f32.mrf.mxu0 }
 0x71a   :  { %v1002_v29 = vadd.f32 %v996_v27, %v3529_v25 }
 0x71b   :  { %v998_v30 = vpop.f32.mrf.mxu0 }
 0x71c   :  { %v999_v31 = vadd.f32 %v2573_v23, %v998_v30  ;;  %1004 = vadd.xlane.f32.xlu1 %v1002_v29 }
 0x71d   :  { %v2912_v32 = vpop.f32.mrf.mxu0 }
 0x71e   :  { %v1003_v33 = vadd.f32 %v999_v31, %v3531_v26  ;;  %v3170_v26 = vld [vmem:[#allocation2 + $0x130] ss:$24 sps:$4 sm:$0xff]  }
 0x71f   :  { %2916 = vmatpush3.bf16.msra.mxu1 %v3170_v26 }
 0x720   :  { %1006 = vadd.xlane.f32.xlu0 %v1003_v33  ;;  %2917 = vmatprep.subr.bf16.mxu1 %v3419_v1 }
 0x723   :  { %2918 = vmatpush3.bf16.msra.mxu1 %v3171_v49 }
 0x724   :  { %2919 = vmatprep.subr.bf16.mxu1 %v3419_v1 }
 0x727   :  { %2920 = vmatpush3.bf16.msra.mxu1 %v3172_v50 }
 0x728   :  { %2921 = vmatprep.subr.bf16.mxu1 %v3419_v1 }
 0x72b   :  { %2922 = vmatpush3.bf16.msra.mxu1 %v3173_v51  ;;  %v3185_v51 = vld [vmem:[#allocation2 + $0x2d0] ss:$24 sps:$4 sm:$0xff]  }
 0x72c   :  { %2923 = vmatprep.subr.bf16.mxu1 %v3419_v1 }
 0x72f   :  { %2924 = vmatpush3.bf16.msra.mxu1 %v3174_v52  ;;  %v3187_v52 = vld [vmem:[#allocation2 + $0x2d4] ss:$24 sps:$4 sm:$0xff]  }
 0x730   :  { %2925 = vmatprep.subr.bf16.mxu1 %v3419_v1 }
 0x733   :  { %2926 = vmatpush3.bf16.msra.mxu1 %v3175_v53  ;;  %v3188_v53 = vld [vmem:[#allocation2 + $0x2d8] ss:$24 sps:$4 sm:$0xff]  }
 0x734   :  { %2927 = vmatprep.subr.bf16.mxu1 %v3419_v1 }
 0x737   :  { %2928 = vmatpush3.bf16.msra.mxu1 %v3176_v55 }
 0x738   :  { %1476 = vmatprep.subr.bf16.mxu1 %v3187_v52 }
 0x7a5   :  { %v1005_v36 = vpop.xlane.xlu1 %1004 }
 0x7a6   :  { %v1008_v37 = vmul.f32 0.015625, %v1005_v36 }
 0x7a8   :  { %v1010_v38 = vsub.f32 %v1002_v29, %v1008_v37 }
 0x7a9   :  { %v1007_v39 = vpop.xlane.xlu0 %1006 }
 0x7aa   :  { %v1009_v40 = vmul.f32 0.015625, %v1007_v39  ;;  %v1012_v44 = vmul.f32 %v3507_v41, %v1010_v38 }
 0x7ac   :  { %v1011_v45 = vsub.f32 %v1003_v33, %v1009_v40  ;;  %v1014_v25 = vmul.f32 %v1012_v44, %v1012_v44  ;;  %v2593_v40 = vld [vmem:[#allocation7 + $0x9] ss:$0 sm:$0xff] }
 0x7ae   :  { %1016 = vadd.xlane.f32.xlu1 %v1014_v25  ;;  %v1013_v46 = vmul.f32 %v3507_v41, %v1011_v45 }
 0x7b0   :  { %v1015_v47 = vmul.f32 %v1013_v46, %v1013_v46 }
 0x7b2   :  { %1018 = vadd.xlane.f32.xlu0 %v1015_v47 }
 0x837   :  { %v1017_v57 = vpop.xlane.xlu1 %1016 }
 0x838   :  { %v1020_v58 = vmul.f32 0.015625, %v1017_v57 }
 0x83a   :  { %v1022_v59 = vadd.f32 1e-12, %v1020_v58 }
 0x83b   :  { %v1019_v60 = vpop.xlane.xlu0 %1018 }
 0x83c   :  { %3277 = vrsqrt.f32 %v1022_v59  ;;  %v1021_v61 = vmul.f32 0.015625, %v1019_v60 }
 0x83e   :  { %v1023_v63 = vadd.f32 1e-12, %v1021_v61 }
 0x840   :  { %3279 = vrsqrt.f32 %v1023_v63 }
 0x849   :  { %v3278_v2 = vpop.eup %3277 }
 0x84a   :  { %v1026_v3 = vmul.f32 %v3278_v2, %v1012_v44 }
 0x84c   :  { %v1033_v7 = vmul.f32 %v2582_v4, %v1026_v3 }
 0x84d   :  { %v3280_v5 = vpop.eup %3279 }
 0x84e   :  { %v1027_v6 = vmul.f32 %v3280_v5, %v1013_v46  ;;  %v1040_v43 = vadd.f32 %v2583_v9, %v1033_v7  ;;  %v3189_v5 = vld [vmem:[#allocation2 + $0x2a0] ss:$24 sps:$4 sm:$0xff]   ;;  %v3195_v7 = vld [vmem:[#allocation2 + $0x274] ss:$24 sps:$4 sm:$0xff]  }
 0x850   :  { %v1034_v42 = vmul.f32 %v2582_v4, %v1027_v6  ;;  %v3191_v4 = vld [vmem:[#allocation2 + $0x2a4] ss:$24 sps:$4 sm:$0xff]   ;;  %v3192_v6 = vld [vmem:[#allocation2 + $0x2a8] ss:$24 sps:$4 sm:$0xff]  }
 0x852   :  { %v1041_v48 = vadd.f32 %v2583_v9, %v1034_v42  ;;  %v3193_v9 = vld [vmem:[#allocation2 + $0x270] ss:$24 sps:$4 sm:$0xff]  }
 0x853   :  { %v3196_v42 = vld [vmem:[#allocation2 + $0x278] ss:$24 sps:$4 sm:$0xff]  }
 0x854   :  { %v1042_v10 = vpack.c.bf16 %v1041_v48, %v1040_v43 }
 0x856   :  { %2930 = vmatmul.mubr.bf16.vlgmr.msra.gmra.mxu1 %v1042_v10  ;;  %v3200_v10 = vld [vmem:[#allocation2 + $0x248] ss:$24 sps:$4 sm:$0xff]  }
 0x857   :  { %1508 = vmatprep.mubr.bf16.mxu1 %v3418_v0  ;;  %v3183_v0 = vld [vmem:[#allocation2 + $0x44] ss:$24 sps:$4 sm:$0xff]   ;;  %1477 = vmatpush1.bf16.msra.mxu1 %v3185_v51 }
 0x858   :  { %2946 = vmatpush3.bf16.msra.mxu0 %v3183_v0  ;;  %1478 = vmatprep.subr.bf16.mxu1 %v3191_v4  ;;  %v3208_v0 = vld [vmem:[#allocation2 + $0x1e8] ss:$24 sps:$4 sm:$0xff]  }
 0x859   :  { %2947 = vmatprep.subr.bf16.mxu0 %v3419_v1 }
 0x85b   :  { %1479 = vmatpush1.bf16.msra.mxu1 %v3189_v5 }
 0x85c   :  { %2948 = vmatpush3.bf16.msra.mxu0 %v3184_v18  ;;  %1480 = vmatprep.subr.bf16.mxu1 %v3195_v7  ;;  %v3211_v18 = vld [vmem:[#allocation2 + $0x1b4] ss:$24 sps:$4 sm:$0xff]  }
 0x85d   :  { %2953 = vmatprep.subr.bf16.mxu0 %v3419_v1 }
 0x85f   :  { %1481 = vmatpush1.bf16.msra.mxu1 %v3193_v9 }
 0x916   :  { %v1146_v20 = vpop.f32.mrf.mxu1 }
 0x917   :  { %v1147_v21 = vadd.f32 %v2584_v19, %v1146_v20  ;;  %v3212_v20 = vld [vmem:[#allocation2 + $0x1b8] ss:$24 sps:$4 sm:$0xff]  }
 0x918   :  { %v2931_v22 = vpop.f32.mrf.mxu1 }
 0x919   :  { %v1155_v23 = vmul.f32 0.70710677, %v1147_v21  ;;  %v1153_v33 = vmul.f32 0.5, %v1147_v21  ;;  %v3215_v21 = vld [vmem:[#allocation2 + $0x184] ss:$24 sps:$4 sm:$0xff]  }
 0x91a   :  { %v1149_v24 = vpop.f32.mrf.mxu1  ;;  %v3213_v22 = vld [vmem:[#allocation2 + $0x180] ss:$24 sps:$4 sm:$0xff]  }
 0x91b   :  { %3281 = verf.f32 %v1155_v23  ;;  %v1150_v27 = vadd.f32 %v2584_v19, %v1149_v24  ;;  %v3209_v19 = vld [vmem:[#allocation2 + $0x1b0] ss:$24 sps:$4 sm:$0xff]  }
 0x91c   :  { %v2932_v28 = vpop.f32.mrf.mxu1  ;;  %v3216_v23 = vld [vmem:[#allocation2 + $0x188] ss:$24 sps:$4 sm:$0xff]  }
 0x91d   :  { %v1156_v29 = vmul.f32 0.70710677, %v1150_v27  ;;  %v1154_v35 = vmul.f32 0.5, %v1150_v27 }
 0x91f   :  { %3283 = verf.f32 %v1156_v29 }
 0x928   :  { %v3282_v30 = vpop.eup %3281 }
 0x929   :  { %v1159_v31 = vadd.f32 1.0, %v3282_v30 }
 0x92b   :  { %v1161_v37 = vmul.f32 %v1159_v31, %v1153_v33 }
 0x92c   :  { %v3284_v32 = vpop.eup %3283 }
 0x92d   :  { %v1160_v36 = vadd.f32 1.0, %v3284_v32 }
 0x92f   :  { %v1162_v38 = vmul.f32 %v1160_v36, %v1154_v35  ;;  %v2602_v35 = vld [vmem:[#allocation7 + $0xa] ss:$0 sm:$0xff] }
 0x931   :  { %v1163_v39 = vpack.c.bf16 %v1162_v38, %v1161_v37 }
 0x933   :  { %2950 = vmatmul.mubr.bf16.vlgmr.msra.gmra.mxu0 %v1163_v39  ;;  %v2603_v39 = vld [vmem:[#allocation7 + $0xb] ss:$0 sm:$0xff] }
 0x934   :  { %2969 = vmatprep.mubr.msk.bf16.mxu0 %vm3420_vm0, %v3419_v1  ;;  %2954 = vmatpush3.bf16.msra.mxu0 %v3188_v53 }
 0x935   :  { %2955 = vmatprep.subr.bf16.mxu0 %v3419_v1 }
 0x938   :  { %2956 = vmatpush3.bf16.msra.mxu0 %v3192_v6 }
 0x939   :  { %2957 = vmatprep.subr.bf16.mxu0 %v3419_v1 }
 0x93c   :  { %2958 = vmatpush3.bf16.msra.mxu0 %v3196_v42 }
 0x93d   :  { %2959 = vmatprep.subr.bf16.mxu0 %v3419_v1 }
 0x940   :  { %2960 = vmatpush3.bf16.msra.mxu0 %v3200_v10 }
 0x941   :  { %2961 = vmatprep.subr.bf16.mxu0 %v3419_v1 }
 0x944   :  { %2962 = vmatpush3.bf16.msra.mxu0 %v3204_v16 }
 0x945   :  { %2963 = vmatprep.subr.bf16.mxu0 %v3419_v1 }
 0x948   :  { %2964 = vmatpush3.bf16.msra.mxu0 %v3208_v0 }
 0x949   :  { %2965 = vmatprep.subr.bf16.mxu0 %v3419_v1 }
 0x94c   :  { %2966 = vmatpush3.bf16.msra.mxu0 %v3212_v20 }
 0x94d   :  { %2967 = vmatprep.subr.bf16.mxu0 %v3419_v1 }
 0x950   :  { %2968 = vmatpush3.bf16.msra.mxu0 %v3216_v23 }
 0x951   :  { %2997 = vmatprep.subr.bf16.mxu0 %v3419_v1 }
 0x9f3   :  { %v1267_v44 = vpop.f32.mrf.mxu0 }
 0x9f4   :  { %v1268_v45 = vadd.f32 %v2593_v40, %v1267_v44 }
 0x9f5   :  { %v2951_v25 = vpop.f32.mrf.mxu0 }
 0x9f6   :  { %v1274_v46 = vadd.f32 %v1268_v45, %v1040_v43  ;;  %v3197_v43 = vld [vmem:[#allocation2 + $0x240] ss:$24 sps:$4 sm:$0xff]  }
 0x9f7   :  { %v1270_v47 = vpop.f32.mrf.mxu0 }
 0x9f8   :  { %v1271_v26 = vadd.f32 %v2593_v40, %v1270_v47  ;;  %1276 = vadd.xlane.f32.xlu1 %v1274_v46 }
 0x9f9   :  { %v2952_v49 = vpop.f32.mrf.mxu0 }
 0x9fa   :  { %v1275_v50 = vadd.f32 %v1271_v26, %v1041_v48  ;;  %v3199_v48 = vld [vmem:[#allocation2 + $0x244] ss:$24 sps:$4 sm:$0xff]   ;;  %v2630_v26 = vld [vmem:[#allocation7 + $0xe] ss:$0 sm:$0xff] }
 0x9fb   :  { %1482 = vmatprep.subr.bf16.mxu1 %v3199_v48 }
 0x9fc   :  { %1278 = vadd.xlane.f32.xlu0 %v1275_v50  ;;  %1483 = vmatpush1.bf16.msra.mxu1 %v3197_v43 }
 0x9fd   :  { %1484 = vmatprep.subr.bf16.mxu1 %v3203_v11 }
 0xa00   :  { %1485 = vmatpush1.bf16.msra.mxu1 %v3201_v12 }
 0xa01   :  { %1486 = vmatprep.subr.bf16.mxu1 %v3207_v13 }
 0xa04   :  { %1487 = vmatpush1.bf16.msra.mxu1 %v3205_v17 }
 0xa05   :  { %1488 = vmatprep.subr.bf16.mxu1 %v3211_v18 }
 0xa08   :  { %1489 = vmatpush1.bf16.msra.mxu1 %v3209_v19 }
 0xa09   :  { %1490 = vmatprep.subr.bf16.mxu1 %v3215_v21 }
 0xa0c   :  { %1491 = vmatpush1.bf16.msra.mxu1 %v3213_v22 }
 0xa0d   :  { %2973 = vmatprep.subr.bf16.mxu1 %v3419_v1 }
 0xa81   :  { %v1277_v55 = vpop.xlane.xlu1 %1276 }
 0xa82   :  { %v1280_v56 = vmul.f32 0.015625, %v1277_v55  ;;  %v2629_v55 = vld [vmem:[#allocation7 + $0xd] ss:$0 sm:$0xff] }
 0xa84   :  { %v1282_v57 = vsub.f32 %v1274_v46, %v1280_v56 }
 0xa85   :  { %v1279_v58 = vpop.xlane.xlu0 %1278 }
 0xa86   :  { %v1281_v59 = vmul.f32 0.015625, %v1279_v58  ;;  %v3640_v60 = vmul.f32 %v3507_v41, %v1282_v57 }
 0xa88   :  { %v1283_v61 = vsub.f32 %v1275_v50, %v1281_v59  ;;  %v1286_v63 = vmul.f32 %v3640_v60, %v3640_v60 }
 0xa8a   :  { %1288 = vadd.xlane.f32.xlu1 %v1286_v63  ;;  %v3645_v2 = vmul.f32 %v3507_v41, %v1283_v61  ;;  %v2628_v61 = vld [vmem:[#allocation7 + $0xc] ss:$0 sm:$0xff] }
 0xa8c   :  { %v1287_v3 = vmul.f32 %v3645_v2, %v3645_v2 }
 0xa8e   :  { %1290 = vadd.xlane.f32.xlu0 %v1287_v3 }
 0xb13   :  { %v1289_v24 = vpop.xlane.xlu1 %1288 }
 0xb14   :  { %v1292_v27 = vmul.f32 0.015625, %v1289_v24 }
 0xb16   :  { %v1294_v28 = vadd.f32 1e-12, %v1292_v27 }
 0xb17   :  { %v1291_v29 = vpop.xlane.xlu0 %1290 }
 0xb18   :  { %3285 = vrsqrt.f32 %v1294_v28  ;;  %v1293_v30 = vmul.f32 0.015625, %v1291_v29 }
 0xb1a   :  { %v1295_v31 = vadd.f32 1e-12, %v1293_v30 }
 0xb1c   :  { %3287 = vrsqrt.f32 %v1295_v31 }
 0xb25   :  { %v3286_v32 = vpop.eup %3285 }
 0xb26   :  { %v1298_v33 = vmul.f32 %v3286_v32, %v3640_v60 }
 0xb28   :  { %v1305_v38 = vmul.f32 %v2602_v35, %v1298_v33 }
 0xb29   :  { %v3288_v36 = vpop.eup %3287 }
 0xb2a   :  { %v1299_v37 = vmul.f32 %v3288_v36, %v3645_v2  ;;  %v3659_v44 = vadd.f32 %v2603_v39, %v1305_v38 }
 0xb2c   :  { %v1306_v40 = vmul.f32 %v2602_v35, %v1299_v37 }
 0xb2e   :  { %v3661_v45 = vadd.f32 %v2603_v39, %v1306_v40 }
 0xb30   :  { %v1314_v25 = vpack.c.bf16 %v3661_v45, %v3659_v44 }
 0xb32   :  { %1509 = vmatmul.mubr.bf16.vlgmr.msra.gmra.mxu1 %v1314_v25  ;;  %2970 = vmatmul.mubr.bf16.vlgmr.msra.gmra.mxu0 %v1314_v25 }
 0xb33   :  { %2975 = vmatprep.mubr.msk.bf16.mxu1 %vm3420_vm0, %v3419_v1  ;;  %3013 = vmatprep.mubr.msk.bf16.mxu0 %vm3420_vm0, %v3419_v1 }
 0xbf2   :  { %v1510_v46 = vpop.f32.mrf.mxu1  ;;  %v1553_v47 = vpop.f32.mrf.mxu0 }
 0xbf3   :  { %v1580_v51 = vadd.f32 %v2630_v26, %v1553_v47  ;;  %v1565_v6 = vadd.f32 %v2628_v61, %v1510_v46 }
 0xbf4   :  { %v1512_v49 = vpop.f32.mrf.mxu1  ;;  %v2971_v50 = vpop.f32.mrf.mxu0 }
 0xbf5   :  { %v3670_v59 = vmul.f32 %v3541_v34, %v1580_v51  ;;  %v1572_v63 = vadd.f32 %v2629_v55, %v1512_v49  ;;  %v1582_v9 = vmul.f32 %v3541_v34, %v1565_v6  ;;  %v1652_v10 = vmul.f32 %v3558_v54, %v1565_v6 }
 0xbf6   :  { %v1514_v52 = vpop.f32.mrf.mxu1  ;;  %v1556_v53 = vpop.f32.mrf.mxu0  ;;  %v1719_v11 = vmul.f32 %v3558_v54, %v1580_v51 }
 0xbf7   :  { %v1581_v56 = vadd.f32 %v2630_v26, %v1556_v53  ;;  %v1566_v3 = vadd.f32 %v2628_v61, %v1514_v52 }
 0xbf8   :  { %v1516_v57 = vpop.f32.mrf.mxu1  ;;  %v2972_v58 = vpop.f32.mrf.mxu0 }
 0xbf9   :  { %v3673_v60 = vmul.f32 %v3541_v34, %v1581_v56  ;;  %v1573_v2 = vadd.f32 %v2629_v55, %v1516_v57  ;;  %v1583_v7 = vmul.f32 %v3541_v34, %v1566_v3  ;;  %v1653_v43 = vmul.f32 %v3558_v54, %v1566_v3  ;;  %v3217_v55 = vld [vmem:[#allocation2 + $0x2dc] ss:$24 sps:$4 sm:$0xff]   ;;  %v3220_v58 = vld [vmem:[#allocation2 + $0x24c] ss:$24 sps:$4 sm:$0xff]  }
 0xbfa   :  { %v1720_v48 = vmul.f32 %v3558_v54, %v1581_v56  ;;  %2998 = vmatpush3.bf16.msra.mxu0 %v3217_v55  ;;  %v3218_v56 = vld [vmem:[#allocation2 + $0x2ac] ss:$24 sps:$4 sm:$0xff]   ;;  %v3219_v57 = vld [vmem:[#allocation2 + $0x27c] ss:$24 sps:$4 sm:$0xff]  }
 0xbfb   :  { %v1651_v4 = vpack.c.bf16 %v3673_v60, %v3670_v59  ;;  %v1574_v5 = vpack.c.bf16 %v1573_v2, %v1572_v63  ;;  %v1584_v42 = vpack.c.bf16 %v1583_v7, %v1582_v9  ;;  %v1654_v12 = vpack.c.bf16 %v1653_v43, %v1652_v10  ;;  %2999 = vmatprep.subr.bf16.mxu0 %v3419_v1  ;;  %v3223_v59 = vld [vmem:[#allocation2 + $0x1bc] ss:$24 sps:$4 sm:$0xff]   ;;  %v3224_v60 = vld [vmem:[#allocation2 + $0x18c] ss:$24 sps:$4 sm:$0xff]  }
 0xbfc   :  { %v1721_v16 = vpack.c.bf16 %v1720_v48, %v1719_v11  ;;  %v3233_v55 = vld [vmem:[#allocation2 + $0x2e4] ss:$24 sps:$4 sm:$0xff]  }
 0xbfd   :  { %2974 = vmatpush3.bf16.xpose.msra.mxu1 %v1574_v5 }
 0xbfe   :  { %2979 = vmatprep.subr.bf16.mxu1 %v3419_v1  ;;  %3000 = vmatpush3.bf16.msra.mxu0 %v3218_v56 }
 0xbff   :  { %3001 = vmatprep.subr.bf16.mxu0 %v3419_v1 }
 0xc02   :  { %3002 = vmatpush3.bf16.msra.mxu0 %v3219_v57 }
 0xc03   :  { %3003 = vmatprep.subr.bf16.mxu0 %v3419_v1 }
 0xc04   :  { %2976 = vmatmul.mubr.bf16.vlgmr.msra.gmra.mxu1 %v1584_v42 }
 0xc05   :  { %2980 = vmatpush3.bf16.xpose.msra.mxu1 %v1574_v5  ;;  %2981 = vmatprep.mubr.msk.bf16.mxu1 %vm3420_vm0, %v3419_v1 }
 0xc06   :  { %2985 = vmatprep.subr.bf16.mxu1 %v3419_v1  ;;  %3004 = vmatpush3.bf16.msra.mxu0 %v3220_v58 }
 0xc07   :  { %3005 = vmatprep.subr.bf16.mxu0 %v3419_v1 }
 0xc0c   :  { %2982 = vmatmul.mubr.bf16.vlgmr.msra.gmra.mxu1 %v1654_v12 }
 0xc0d   :  { %2986 = vmatpush3.bf16.msra.mxu1 %v1721_v16  ;;  %2987 = vmatprep.mubr.msk.bf16.mxu1 %vm3420_vm0, %v3419_v1  ;;  %v3221_v16 = vld [vmem:[#allocation2 + $0x21c] ss:$24 sps:$4 sm:$0xff]  }
 0xc0e   :  { %2991 = vmatprep.subr.bf16.mxu1 %v3419_v1  ;;  %3006 = vmatpush3.bf16.msra.mxu0 %v3221_v16  ;;  %v3234_v16 = vld [vmem:[#allocation2 + $0x2b4] ss:$24 sps:$4 sm:$0xff]  }
 0xc0f   :  { %3007 = vmatprep.subr.bf16.mxu0 %v3419_v1 }
 0xcc4   :  { %v1619_v34 = vpop.f32.mrf.mxu1 }
 0xcc5   :  { %v1620_v21 = vadd.f32 %v1619_v34, %v3580_v8  ;;  %v3222_v34 = vld [vmem:[#allocation2 + $0x1ec] ss:$24 sps:$4 sm:$0xff]  }
 0xcc6   :  { %v2977_v13 = vpop.f32.mrf.mxu1  ;;  %3008 = vmatpush3.bf16.msra.mxu0 %v3222_v34  ;;  %v3235_v34 = vld [vmem:[#allocation2 + $0x284] ss:$24 sps:$4 sm:$0xff]  }
 0xcc7   :  { %v1626_v28 = vsel %vm706_vm3, %v1620_v21, -inf  ;;  %3009 = vmatprep.subr.bf16.mxu0 %v3419_v1 }
 0xcc8   :  { %v1622_v17 = vpop.f32.mrf.mxu1 }
 0xcc9   :  { %v1623_v27 = vadd.f32 %v1622_v17, %v3584_v15 }
 0xcca   :  { %v2978_v0 = vpop.f32.mrf.mxu1  ;;  %3010 = vmatpush3.bf16.msra.mxu0 %v3223_v59  ;;  %v3236_v59 = vld [vmem:[#allocation2 + $0x254] ss:$24 sps:$4 sm:$0xff]  }
 0xccb   :  { %v1629_v30 = vsel %vm706_vm3, %v1623_v27, -inf  ;;  %3011 = vmatprep.subr.bf16.mxu0 %v3419_v1 }
 0xccc   :  { %v1689_v18 = vpop.f32.mrf.mxu1 }
 0xccd   :  { %v1690_v19 = vadd.f32 %v1689_v18, %v3580_v8 }
 0xcce   :  { %v2983_v20 = vpop.f32.mrf.mxu1  ;;  %3012 = vmatpush3.bf16.msra.mxu0 %v3224_v60  ;;  %v3237_v60 = vld [vmem:[#allocation2 + $0x224] ss:$24 sps:$4 sm:$0xff]  }
 0xccf   :  { %v1696_v54 = vsel %vm706_vm3, %v1690_v19, -inf  ;;  %3037 = vmatprep.subr.bf16.mxu0 %v3419_v1 }
 0xcd0   :  { %1697 = vmax.xlane.f32.xlu1 %v1696_v54  ;;  %v1692_v22 = vpop.f32.mrf.mxu1 }
 0xcd1   :  { %v1693_v23 = vadd.f32 %v1692_v22, %v3584_v15 }
 0xcd2   :  { %v2984_v24 = vpop.f32.mrf.mxu1 }
 0xcd3   :  { %v1699_v29 = vsel %vm706_vm3, %v1693_v23, -inf  ;;  %v2633_v24 = vld [vmem:[#allocation7 + $0xf] ss:$0 sm:$0xff] }
 0xcd4   :  { %1627 = vmax.xlane.f32.xlu1 %v1626_v28  ;;  %1700 = vmax.xlane.f32.xlu0 %v1699_v29 }
 0xcd8   :  { %1630 = vmax.xlane.f32.xlu0 %v1629_v30 }
 0xd59   :  { %v1698_v31 = vpop.xlane.xlu1 %1697 }
 0xd5a   :  { %v1702_v8 = vsub.f32 %v1690_v19, %v1698_v31 }
 0xd5c   :  { %v1704_v32 = vmul.f32 1.442695, %v1702_v8 }
 0xd5d   :  { %v1628_v33 = vpop.xlane.xlu1 %1627  ;;  %v1701_v35 = vpop.xlane.xlu0 %1700 }
 0xd5e   :  { %3289 = vpow2.f32 %v1704_v32  ;;  %v1632_v36 = vsub.f32 %v1620_v21, %v1628_v33  ;;  %v1703_v37 = vsub.f32 %v1693_v23, %v1701_v35  ;;  %v3225_v35 = vld [vmem:[#allocation2 + $0x2e0] ss:$24 sps:$4 sm:$0xff]  }
 0xd60   :  { %v1634_v38 = vmul.f32 1.442695, %v1632_v36  ;;  %v1706_v39 = vmul.f32 1.442695, %v1703_v37 }
 0xd61   :  { %v1631_v15 = vpop.xlane.xlu0 %1630 }
 0xd62   :  { %3291 = vpow2.f32 %v1634_v38  ;;  %v1633_v40 = vsub.f32 %v1623_v27, %v1631_v15 }
 0xd63   :  { %3293 = vpow2.f32 %v1706_v39 }
 0xd64   :  { %v1636_v25 = vmul.f32 1.442695, %v1633_v40 }
 0xd66   :  { %3295 = vpow2.f32 %v1636_v25 }
 0xd6b   :  { %v3290_v46 = vpop.eup %3289 }
 0xd6c   :  { %v1708_v47 = vsel %vm706_vm3, %v3290_v46, 0.0 }
 0xd6d   :  { %1709 = vadd.xlane.f32.xlu1 %v1708_v47 }
 0xd6f   :  { %v3292_v26 = vpop.eup %3291 }
 0xd70   :  { %v3294_v49 = vpop.eup %3293  ;;  %v1638_v50 = vsel %vm706_vm3, %v3292_v26, 0.0 }
 0xd71   :  { %1639 = vadd.xlane.f32.xlu1 %v1638_v50  ;;  %v1711_v51 = vsel %vm706_vm3, %v3294_v49, 0.0  ;;  %v3229_v50 = vld [vmem:[#allocation2 + $0x220] ss:$24 sps:$4 sm:$0xff]  }
 0xd72   :  { %1712 = vadd.xlane.f32.xlu0 %v1711_v51  ;;  %v3230_v51 = vld [vmem:[#allocation2 + $0x1f0] ss:$24 sps:$4 sm:$0xff]  }
 0xd73   :  { %v3296_v52 = vpop.eup %3295 }
 0xd74   :  { %v1641_v53 = vsel %vm706_vm3, %v3296_v52, 0.0 }
 0xd76   :  { %1642 = vadd.xlane.f32.xlu0 %v1641_v53  ;;  %v3232_v53 = vld [vmem:[#allocation2 + $0x190] ss:$24 sps:$4 sm:$0xff]  }
 0xdf6   :  { %v1710_v61 = vpop.xlane.xlu1 %1709 }
 0xdf7   :  { %3297 = vrcp.f32 %v1710_v61 }
 0xdfa   :  { %v1640_v2 = vpop.xlane.xlu1 %1639 }
 0xdfb   :  { %v1713_v63 = vpop.xlane.xlu0 %1712 }
 0xdfc   :  { %3299 = vrcp.f32 %v1713_v63 }
 0xdff   :  { %v1643_v3 = vpop.xlane.xlu0 %1642 }
 0xe00   :  { %3301 = vrcp.f32 %v1643_v3 }
 0xe01   :  { %3303 = vrcp.f32 %v1640_v2 }
 0xe04   :  { %v3298_v5 = vpop.eup %3297 }
 0xe05   :  { %v1716_v7 = vmul.f32 %v3298_v5, %v3290_v46 }
 0xe09   :  { %v3300_v6 = vpop.eup %3299 }
 0xe0a   :  { %v1717_v9 = vmul.f32 %v3300_v6, %v3294_v49  ;;  %v3228_v49 = vld [vmem:[#allocation2 + $0x250] ss:$24 sps:$4 sm:$0xff]  }
 0xe0b   :  { %v2642_v6 = vld [vmem:[#allocation7 + $0x10] ss:$0 sm:$0xff] }
 0xe0c   :  { %v1718_v42 = vpack.c.bf16 %v1717_v9, %v1716_v7 }
 0xe0d   :  { %v3302_v43 = vpop.eup %3301 }
 0xe0e   :  { %2988 = vmatmul.mubr.msk.bf16.vlgmr.msra.gmra.mxu1 %vm706_vm3, %v1718_v42  ;;  %v3304_v48 = vpop.eup %3303  ;;  %v1647_v10 = vmul.f32 %v3302_v43, %v3296_v52  ;;  %v3231_v52 = vld [vmem:[#allocation2 + $0x1c0] ss:$24 sps:$4 sm:$0xff]   ;;  %v2643_v43 = vld [vmem:[#allocation7 + $0x11] ss:$0 sm:$0xff] }
 0xe0f   :  { %2992 = vmatpush3.bf16.msra.mxu1 %v1651_v4  ;;  %2993 = vmatprep.mubr.msk.bf16.mxu1 %vm3420_vm0, %v3419_v1  ;;  %v1646_v11 = vmul.f32 %v3304_v48, %v3292_v26  ;;  %v3227_v26 = vld [vmem:[#allocation2 + $0x280] ss:$24 sps:$4 sm:$0xff]  }
 0xe10   :  { %3017 = vmatprep.subr.bf16.mxu1 %v3419_v1 }
 0xe11   :  { %v1648_v12 = vpack.c.bf16 %v1647_v10, %v1646_v11 }
 0xe16   :  { %2994 = vmatmul.mubr.msk.bf16.vlgmr.msra.gmra.mxu1 %vm706_vm3, %v1648_v12 }
 0xe17   :  { %3033 = vmatprep.mubr.msk.bf16.mxu1 %vm3420_vm0, %v3419_v1  ;;  %3018 = vmatpush3.bf16.msra.mxu1 %v3225_v35 }
 0xe18   :  { %3019 = vmatprep.subr.bf16.mxu1 %v3419_v1 }
 0xece   :  { %v1759_v4 = vpop.f32.mrf.mxu1 }
 0xed0   :  { %v2989_v13 = vpop.f32.mrf.mxu1 }
 0xed1   :  { %v3239_v13 = vld [vmem:[#allocation2 + $0x1c4] ss:$24 sps:$4 sm:$0xff]  }
 0xed2   :  { %v1762_v17 = vpop.f32.mrf.mxu1 }
 0xed4   :  { %v2990_v0 = vpop.f32.mrf.mxu1 }
 0xed5   :  { %v2644_v0 = vld [vmem:[#allocation7 + $0x12] ss:$0 sm:$0xff] }
 0xed6   :  { %v1803_v18 = vpop.f32.mrf.mxu1 }
 0xed7   :  { %v1804_v21 = vadd.f32 %v1803_v18, %v1759_v4  ;;  %v3238_v4 = vld [vmem:[#allocation2 + $0x1f4] ss:$24 sps:$4 sm:$0xff]  }
 0xed8   :  { %v2995_v19 = vpop.f32.mrf.mxu1 }
 0xeda   :  { %v1806_v20 = vpop.f32.mrf.mxu1 }
 0xedb   :  { %v1807_v54 = vadd.f32 %v1806_v20, %v1762_v17  ;;  %v3240_v17 = vld [vmem:[#allocation2 + $0x194] ss:$24 sps:$4 sm:$0xff]  }
 0xedc   :  { %v2996_v22 = vpop.f32.mrf.mxu1 }
 0xedd   :  { %v1810_v23 = vpack.c.bf16 %v1807_v54, %v1804_v21 }
 0xedf   :  { %3014 = vmatmul.mubr.bf16.vlgmr.msra.gmra.mxu0 %v1810_v23 }
 0xee0   :  { %3053 = vmatprep.mubr.msk.bf16.mxu0 %vm3420_vm0, %v3419_v1  ;;  %3038 = vmatpush3.bf16.msra.mxu0 %v3233_v55 }
 0xee1   :  { %3039 = vmatprep.subr.bf16.mxu0 %v3419_v1 }
 0xee4   :  { %3040 = vmatpush3.bf16.msra.mxu0 %v3234_v16 }
 0xee5   :  { %3041 = vmatprep.subr.bf16.mxu0 %v3419_v1 }
 0xee8   :  { %3042 = vmatpush3.bf16.msra.mxu0 %v3235_v34 }
 0xee9   :  { %3043 = vmatprep.subr.bf16.mxu0 %v3419_v1 }
 0xeec   :  { %3044 = vmatpush3.bf16.msra.mxu0 %v3236_v59 }
 0xeed   :  { %3045 = vmatprep.subr.bf16.mxu0 %v3419_v1 }
 0xef0   :  { %3046 = vmatpush3.bf16.msra.mxu0 %v3237_v60 }
 0xef1   :  { %3047 = vmatprep.subr.bf16.mxu0 %v3419_v1 }
 0xef4   :  { %3048 = vmatpush3.bf16.msra.mxu0 %v3238_v4  ;;  %v2662_v4 = vld [vmem:[#allocation7 + $0x14] ss:$0 sm:$0xff] }
 0xef5   :  { %3049 = vmatprep.subr.bf16.mxu0 %v3419_v1 }
 0xef8   :  { %3050 = vmatpush3.bf16.msra.mxu0 %v3239_v13 }
 0xef9   :  { %3051 = vmatprep.subr.bf16.mxu0 %v3419_v1 }
 0xefc   :  { %3052 = vmatpush3.bf16.msra.mxu0 %v3240_v17 }
 0xefd   :  { %3077 = vmatprep.subr.bf16.mxu0 %v3419_v1 }
 0xf9f   :  { %v1914_v27 = vpop.f32.mrf.mxu0 }
 0xfa0   :  { %v1915_v28 = vadd.f32 %v2633_v24, %v1914_v27 }
 0xfa1   :  { %v3015_v29 = vpop.f32.mrf.mxu0 }
 0xfa2   :  { %v1921_v30 = vadd.f32 %v1915_v28, %v3659_v44 }
 0xfa3   :  { %v1917_v31 = vpop.f32.mrf.mxu0 }
 0xfa4   :  { %v1918_v8 = vadd.f32 %v2633_v24, %v1917_v31  ;;  %1923 = vadd.xlane.f32.xlu1 %v1921_v30 }
 0xfa5   :  { %v3016_v32 = vpop.f32.mrf.mxu0 }
 0xfa6   :  { %v1922_v33 = vadd.f32 %v1918_v8, %v3661_v45  ;;  %v3226_v45 = vld [vmem:[#allocation2 + $0x2b0] ss:$24 sps:$4 sm:$0xff]  }
 0xfa7   :  { %3020 = vmatpush3.bf16.msra.mxu1 %v3226_v45 }
 0xfa8   :  { %1925 = vadd.xlane.f32.xlu0 %v1922_v33  ;;  %3021 = vmatprep.subr.bf16.mxu1 %v3419_v1 }
 0xfab   :  { %3022 = vmatpush3.bf16.msra.mxu1 %v3227_v26 }
 0xfac   :  { %3023 = vmatprep.subr.bf16.mxu1 %v3419_v1 }
 0xfaf   :  { %3024 = vmatpush3.bf16.msra.mxu1 %v3228_v49 }
 0xfb0   :  { %3025 = vmatprep.subr.bf16.mxu1 %v3419_v1 }
 0xfb3   :  { %3026 = vmatpush3.bf16.msra.mxu1 %v3229_v50 }
 0xfb4   :  { %3027 = vmatprep.subr.bf16.mxu1 %v3419_v1 }
 0xfb7   :  { %3028 = vmatpush3.bf16.msra.mxu1 %v3230_v51 }
 0xfb8   :  { %3029 = vmatprep.subr.bf16.mxu1 %v3419_v1 }
 0xfbb   :  { %3030 = vmatpush3.bf16.msra.mxu1 %v3231_v52 }
 0xfbc   :  { %3031 = vmatprep.subr.bf16.mxu1 %v3419_v1 }
 0xfbf   :  { %3032 = vmatpush3.bf16.msra.mxu1 %v3232_v53 }
 0xfc0   :  { %3057 = vmatprep.subr.bf16.mxu1 %v3419_v1 }
0x102d   :  { %v1924_v36 = vpop.xlane.xlu1 %1923 }
0x102e   :  { %v1927_v37 = vmul.f32 0.015625, %v1924_v36  ;;  %v2653_v36 = vld [vmem:[#allocation7 + $0x13] ss:$0 sm:$0xff] }
0x1030   :  { %v1929_v38 = vsub.f32 %v1921_v30, %v1927_v37 }
0x1031   :  { %v1926_v39 = vpop.xlane.xlu0 %1925 }
0x1032   :  { %v1928_v15 = vmul.f32 0.015625, %v1926_v39  ;;  %v1931_v40 = vmul.f32 %v3507_v41, %v1929_v38 }
0x1034   :  { %v1930_v25 = vsub.f32 %v1922_v33, %v1928_v15  ;;  %v1933_v44 = vmul.f32 %v1931_v40, %v1931_v40 }
0x1036   :  { %1935 = vadd.xlane.f32.xlu1 %v1933_v44  ;;  %v1932_v46 = vmul.f32 %v3507_v41, %v1930_v25 }
0x1038   :  { %v1934_v47 = vmul.f32 %v1932_v46, %v1932_v46 }
0x103a   :  { %1937 = vadd.xlane.f32.xlu0 %v1934_v47 }
0x10bf   :  { %v1936_v56 = vpop.xlane.xlu1 %1935 }
0x10c0   :  { %v1939_v57 = vmul.f32 0.015625, %v1936_v56 }
0x10c2   :  { %v1941_v58 = vadd.f32 1e-12, %v1939_v57  ;;  %v3241_v57 = vld [vmem:[#allocation5 + $0xe8] ss:$16 sps:$4 sm:$0xff]  }
0x10c3   :  { %v1938_v61 = vpop.xlane.xlu0 %1937 }
0x10c4   :  { %3305 = vrsqrt.f32 %v1941_v58  ;;  %v1940_v63 = vmul.f32 0.015625, %v1938_v61  ;;  %v3242_v58 = vld [vmem:[#allocation5 + $0xc8] ss:$16 sps:$4 sm:$0xff]  }
0x10c5   :  { %v3243_v61 = vld [vmem:[#allocation5 + $0xa8] ss:$16 sps:$4 sm:$0xff]  }
0x10c6   :  { %v1942_v2 = vadd.f32 1e-12, %v1940_v63  ;;  %v3244_v63 = vld [vmem:[#allocation5 + $0x88] ss:$16 sps:$4 sm:$0xff]  }
0x10c8   :  { %3307 = vrsqrt.f32 %v1942_v2  ;;  %v3245_v2 = vld [vmem:[#allocation5 + $0x68] ss:$16 sps:$4 sm:$0xff]  }
0x10d1   :  { %v3306_v3 = vpop.eup %3305 }
0x10d2   :  { %v1945_v5 = vmul.f32 %v3306_v3, %v1931_v40  ;;  %v3247_v3 = vld [vmem:[#allocation5 + $0x28] ss:$16 sps:$4 sm:$0xff]  }
0x10d4   :  { %v1952_v42 = vmul.f32 %v2642_v6, %v1945_v5  ;;  %v3248_v5 = vld [vmem:[#allocation5 + $0x8] ss:$16 sps:$4 sm:$0xff]  }
0x10d5   :  { %v3308_v7 = vpop.eup %3307 }
0x10d6   :  { %v1946_v9 = vmul.f32 %v3308_v7, %v1932_v46  ;;  %v1959_v10 = vadd.f32 %v2643_v43, %v1952_v42  ;;  %v3250_v7 = vld [vmem:[#allocation5 + $0xcc] ss:$16 sps:$4 sm:$0xff]  }
0x10d7   :  { %v3252_v42 = vld [vmem:[#allocation5 + $0x8c] ss:$16 sps:$4 sm:$0xff]  }
0x10d8   :  { %v1953_v48 = vmul.f32 %v2642_v6, %v1946_v9  ;;  %v3249_v6 = vld [vmem:[#allocation5 + $0xec] ss:$16 sps:$4 sm:$0xff]  }
0x10d9   :  { %v3251_v9 = vld [vmem:[#allocation5 + $0xac] ss:$16 sps:$4 sm:$0xff]  }
0x10da   :  { %v1960_v11 = vadd.f32 %v2643_v43, %v1953_v48 }
0x10dc   :  { %v1961_v12 = vpack.c.bf16 %v1960_v11, %v1959_v10 }
0x10de   :  { %3034 = vmatmul.mubr.bf16.vlgmr.msra.gmra.mxu1 %v1961_v12 }
0x10df   :  { %3073 = vmatprep.mubr.msk.bf16.mxu1 %vm3420_vm0, %v3419_v1  ;;  %3058 = vmatpush3.bf16.msra.mxu1 %v3241_v57 }
0x10e0   :  { %3059 = vmatprep.subr.bf16.mxu1 %v3419_v1 }
0x10e3   :  { %3060 = vmatpush3.bf16.msra.mxu1 %v3242_v58 }
0x10e4   :  { %3061 = vmatprep.subr.bf16.mxu1 %v3419_v1 }
0x10e7   :  { %3062 = vmatpush3.bf16.msra.mxu1 %v3243_v61 }
0x10e8   :  { %3063 = vmatprep.subr.bf16.mxu1 %v3419_v1 }
0x10eb   :  { %3064 = vmatpush3.bf16.msra.mxu1 %v3244_v63 }
0x10ec   :  { %3065 = vmatprep.subr.bf16.mxu1 %v3419_v1 }
0x10ef   :  { %3066 = vmatpush3.bf16.msra.mxu1 %v3245_v2 }
0x10f0   :  { %3067 = vmatprep.subr.bf16.mxu1 %v3419_v1 }
0x119e   :  { %v2065_v18 = vpop.f32.mrf.mxu1 }
0x119f   :  { %v2066_v19 = vadd.f32 %v2644_v0, %v2065_v18  ;;  %v2663_v18 = vld [vmem:[#allocation7 + $0x15] ss:$0 sm:$0xff] }
0x11a0   :  { %v3035_v20 = vpop.f32.mrf.mxu1 }
0x11a1   :  { %v2074_v21 = vmul.f32 0.70710677, %v2066_v19  ;;  %v2072_v30 = vmul.f32 0.5, %v2066_v19 }
0x11a2   :  { %v2068_v54 = vpop.f32.mrf.mxu1 }
0x11a3   :  { %3309 = verf.f32 %v2074_v21  ;;  %v2069_v22 = vadd.f32 %v2644_v0, %v2068_v54 }
0x11a4   :  { %v3036_v23 = vpop.f32.mrf.mxu1 }
0x11a5   :  { %v2075_v24 = vmul.f32 0.70710677, %v2069_v22  ;;  %v2073_v31 = vmul.f32 0.5, %v2069_v22  ;;  %v3253_v23 = vld [vmem:[#allocation5 + $0x6c] ss:$16 sps:$4 sm:$0xff]  }
0x11a7   :  { %3311 = verf.f32 %v2075_v24  ;;  %v3254_v24 = vld [vmem:[#allocation5 + $0x4c] ss:$16 sps:$4 sm:$0xff]  }
0x11b0   :  { %v3310_v27 = vpop.eup %3309 }
0x11b1   :  { %v2078_v28 = vadd.f32 1.0, %v3310_v27  ;;  %v3255_v27 = vld [vmem:[#allocation5 + $0x2c] ss:$16 sps:$4 sm:$0xff]  }
0x11b3   :  { %v2080_v32 = vmul.f32 %v2078_v28, %v2072_v30  ;;  %v3256_v28 = vld [vmem:[#allocation5 + $0xc] ss:$16 sps:$4 sm:$0xff]  }
0x11b4   :  { %v3312_v29 = vpop.eup %3311 }
0x11b5   :  { %v2079_v8 = vadd.f32 1.0, %v3312_v29  ;;  %v2354_v29 = vld [vmem:[#allocation7 + $0x1a] sm:$0x1] }
0x11b6   :  { %v2355_v30 = vadd.f32 1e-05, %v2354_v29 }
0x11b7   :  { %v2081_v33 = vmul.f32 %v2079_v8, %v2073_v31  ;;  %v2664_v8 = vld [vmem:[#allocation7 + $0x16] ss:$0 sm:$0xff] }
0x11b9   :  { %v2082_v35 = vpack.c.bf16 %v2081_v33, %v2080_v32  ;;  %v2673_v33 = vld [vmem:[#allocation7 + $0x19] ss:$0 sm:$0xff] }
0x11bb   :  { %3054 = vmatmul.mubr.bf16.vlgmr.msra.gmra.mxu0 %v2082_v35 }
0x11bc   :  { %3093 = vmatprep.mubr.msk.bf16.mxu0 %vm3420_vm0, %v3419_v1  ;;  %3078 = vmatpush3.bf16.msra.mxu0 %v3249_v6  ;;  %vm2236_vm0 = vcmask 1040384  }
0x11bd   :  { %3079 = vmatprep.subr.bf16.mxu0 %v3419_v1 }
0x11c0   :  { %3080 = vmatpush3.bf16.msra.mxu0 %v3250_v7 }
0x11c1   :  { %3081 = vmatprep.subr.bf16.mxu0 %v3419_v1 }
0x11c4   :  { %3082 = vmatpush3.bf16.msra.mxu0 %v3251_v9 }
0x11c5   :  { %3083 = vmatprep.subr.bf16.mxu0 %v3419_v1 }
0x11c8   :  { %3084 = vmatpush3.bf16.msra.mxu0 %v3252_v42 }
0x11c9   :  { %3085 = vmatprep.subr.bf16.mxu0 %v3419_v1 }
0x11cc   :  { %3086 = vmatpush3.bf16.msra.mxu0 %v3253_v23 }
0x11cd   :  { %3087 = vmatprep.subr.bf16.mxu0 %v3419_v1 }
0x11d0   :  { %3088 = vmatpush3.bf16.msra.mxu0 %v3254_v24 }
0x11d1   :  { %3089 = vmatprep.subr.bf16.mxu0 %v3419_v1 }
0x11d4   :  { %3090 = vmatpush3.bf16.msra.mxu0 %v3255_v27 }
0x11d5   :  { %3091 = vmatprep.subr.bf16.mxu0 %v3419_v1 }
0x11d8   :  { %3092 = vmatpush3.bf16.msra.mxu0 %v3256_v28 }
0x127b   :  { %v2186_v37 = vpop.f32.mrf.mxu0 }
0x127c   :  { %v2187_v38 = vadd.f32 %v2653_v36, %v2186_v37 }
0x127d   :  { %v3055_v39 = vpop.f32.mrf.mxu0 }
0x127e   :  { %v2193_v15 = vadd.f32 %v2187_v38, %v1959_v10  ;;  %v2674_v39 = vld [vmem:[#allocation7 + $0x17] ss:$0 sm:$0xff] }
0x127f   :  { %v2189_v40 = vpop.f32.mrf.mxu0 }
0x1280   :  { %v2190_v25 = vadd.f32 %v2653_v36, %v2189_v40  ;;  %2195 = vadd.xlane.f32.xlu0 %v2193_v15 }
0x1281   :  { %v3056_v44 = vpop.f32.mrf.mxu0 }
0x1282   :  { %v2194_v46 = vadd.f32 %v2190_v25, %v1960_v11  ;;  %v2675_v44 = vld [vmem:[#allocation7 + $0x18] ss:$0 sm:$0xff] }
0x1284   :  { %2197 = vadd.xlane.f32.xlu1 %v2194_v46 }
0x1309   :  { %v2196_v47 = vpop.xlane.xlu0 %2195 }
0x130a   :  { %v2199_v45 = vmul.f32 0.015625, %v2196_v47 }
0x130c   :  { %v2201_v26 = vsub.f32 %v2193_v15, %v2199_v45 }
0x130d   :  { %v2198_v49 = vpop.xlane.xlu1 %2197 }
0x130e   :  { %v2200_v50 = vmul.f32 0.015625, %v2198_v49  ;;  %v2203_v51 = vmul.f32 %v3507_v41, %v2201_v26  ;;  %v2676_v26 = vld [vmem:[#allocation7 + $0x1b] ss:$0 sm:$0xff] }
0x1310   :  { %v2202_v52 = vsub.f32 %v2194_v46, %v2200_v50  ;;  %v2205_v53 = vmul.f32 %v2203_v51, %v2203_v51 }
0x1312   :  { %2207 = vadd.xlane.f32.xlu0 %v2205_v53  ;;  %v2204_v55 = vmul.f32 %v3507_v41, %v2202_v52  ;;  %v3246_v41 = vld [vmem:[#allocation5 + $0x48] ss:$16 sps:$4 sm:$0xff]  }
0x1313   :  { %3068 = vmatpush3.bf16.msra.mxu1 %v3246_v41 }
0x1314   :  { %v2206_v56 = vmul.f32 %v2204_v55, %v2204_v55  ;;  %3069 = vmatprep.subr.bf16.mxu1 %v3419_v1 }
0x1316   :  { %2209 = vadd.xlane.f32.xlu1 %v2206_v56 }
0x1317   :  { %3070 = vmatpush3.bf16.msra.mxu1 %v3247_v3 }
0x1318   :  { %3071 = vmatprep.subr.bf16.mxu1 %v3419_v1 }
0x131b   :  { %3072 = vmatpush3.bf16.msra.mxu1 %v3248_v5 }
0x139b   :  { %v2208_v43 = vpop.xlane.xlu0 %2207 }
0x139c   :  { %v2211_v48 = vmul.f32 0.015625, %v2208_v43 }
0x139e   :  { %v2213_v10 = vadd.f32 1e-12, %v2211_v48 }
0x139f   :  { %v2210_v11 = vpop.xlane.xlu1 %2209 }
0x13a0   :  { %3313 = vrsqrt.f32 %v2213_v10  ;;  %v2212_v12 = vmul.f32 0.015625, %v2210_v11 }
0x13a2   :  { %v2214_v16 = vadd.f32 1e-12, %v2212_v12 }
0x13a4   :  { %3315 = vrsqrt.f32 %v2214_v16 }
0x13a5   :  { %3317 = vrsqrt.f32 %v2355_v30 }
0x13ad   :  { %v3314_v34 = vpop.eup %3313 }
0x13ae   :  { %v2217_v59 = vmul.f32 %v3314_v34, %v2203_v51 }
0x13b0   :  { %v2224_v17 = vmul.f32 %v2662_v4, %v2217_v59 }
0x13b1   :  { %v3316_v60 = vpop.eup %3315 }
0x13b2   :  { %v2218_v13 = vmul.f32 %v3316_v60, %v2204_v55  ;;  %v2231_v20 = vadd.f32 %v2663_v18, %v2224_v17  ;;  %v3318_v31 = vpop.eup %3317 }
0x13b3   :  { %v2360_v36 = vrot.slane %v3318_v31, %v380_v62 }
0x13b4   :  { %v2225_v0 = vmul.f32 %v2662_v4, %v2218_v13 }
0x13b6   :  { %v2232_v19 = vadd.f32 %v2663_v18, %v2225_v0 }
0x13b8   :  { %v2234_v21 = vrot.slane %v2232_v19, 7 }
0x13ba   :  { %v2237_v54 = vsel %vm2236_vm0, %v2231_v20, %v2234_v21 }
0x13bb   :  { %v2238_v22 = vpack.c.bf16 %v2237_v54, %v2237_v54 }
0x13bd   :  { %3074 = vmatmul.mubr.bf16.vlgmr.msra.gmra.mxu1 %v2238_v22 }
0x147d   :  { %v2342_v32 = vpop.f32.mrf.mxu1 }
0x147e   :  { %v2343_v35 = vadd.f32 %v2664_v8, %v2342_v32 }
0x147f   :  { %v3075_v37 = vpop.f32.mrf.mxu1 }
0x1480   :  { %v2353_v38 = vsub.f32 %v2343_v35, %v2673_v33 }
0x1481   :  { %v2345_v15 = vpop.f32.mrf.mxu1 }
0x1482   :  { %v2361_v40 = vmul.f32 %v2360_v36, %v2353_v38 }
0x1483   :  { %v3076_v25 = vpop.f32.mrf.mxu1 }
0x1484   :  { %v2367_v1 = vmul.f32 %v2674_v39, %v2361_v40 }
0x1486   :  { %v2373_v46 = vadd.f32 %v2675_v44, %v2367_v1 }
0x1488   :  { %v2374_v47 = vmax.f32 %v2373_v46, 0.0 }
0x148a   :  { %v2375_v45 = vpack.c.bf16 %v2374_v47, %v2374_v47 }
0x148c   :  { %3094 = vmatmul.mubr.bf16.vlgmr.msra.gmra.mxu0 %v2375_v45 }
0x154c   :  { %v2479_v49 = vpop.f32.mrf.mxu0 }
0x154d   :  { %v2480_v50 = vadd.f32 %v2676_v26, %v2479_v49 }
0x154e   :  { %v3095_v51 = vpop.f32.mrf.mxu0 }
0x154f   :  { %v2486_v52 = vsel %vm2485_vm4, %v2480_v50, -inf }
0x1550   :  { %2487 = vmax.xlane.f32.xlu1 %v2486_v52  ;;  %v2482_v14 = vpop.f32.mrf.mxu0 }
0x1552   :  { %v3096_v62 = vpop.f32.mrf.mxu0 }
0x15d9   :  { %v2488_v53 = vpop.xlane.xlu1 %2487 }
0x15da   :  { %v2489_v55 = vsub.f32 %v2480_v50, %v2488_v53 }
0x15dc   :  { %v2490_v56 = vmul.f32 1.442695, %v2489_v55 }
0x15de   :  { %3319 = vpow2.f32 %v2490_v56 }
0x15eb   :  { %v3320_v57 = vpop.eup %3319 }
0x15ec   :  { %v2492_v58 = vsel %vm2485_vm4, %v3320_v57, 0.0 }
0x15ed   :  { %2493 = vadd.xlane.f32.xlu0 %v2492_v58 }
0x1676   :  { %v2494_v61 = vpop.xlane.xlu0 %2493 }
0x1677   :  { %3321 = vrcp.f32 %v2494_v61 }
0x1684   :  { %v3322_v63 = vpop.eup %3321 }
0x1685   :  { %v2496_v2 = vmul.f32 %v3322_v63, %v3320_v57 }
0x1687   :  { %2497 = vst [vmem:[#allocation8] sm:$0x3] %v2496_v2 }
0x1688   :  { %3394 = shalt.err (!%p3391_p5)
}
0x1689   :  { %2507 = dma.vmem_to_hbm [thread:$0]  %s2505_s16, 32, %s3772_s5, [#allocation4]  }
0x168a   :  { %3407 = dma.done.wait [#allocation4], 32  }
0x168b   :  { %3408 = vsyncadd [#allocation4], 4294967264 }
0x168c   :  { %2511 = vsyncpa [#allocation3], 1 }
0x168d   :  { %2512 = vsyncpa [#allocation6], 1 }
0x168e   :  { %2513 = vsyncpa [#allocation4], 1 }

</bundles_post_ra>
